<compile_context>
chip_gen: v7x
topology: tpu7x:2x2x1
jax: 0.10.0
libtpu: 0.0.40
codegen_flags: <defaults>
</compile_context>

<pallas_src>
import functools
import math

import jax
import jax.numpy as jnp
from jax.experimental import pallas as pl
from jax.experimental.pallas import tpu as pltpu


def _encoder_layer_kernel(
    x_ref,                      # (Nb, L, E) f32 activation block
    w_in_ref, b_in_ref,         # (E, 3E) bf16, (1, 3E) f32  fused, pre-transposed, pre-scaled QKV
    wo_ref, bo_ref,             # (E, E)  bf16, (1, E)  f32  pre-transposed out-proj
    g1_ref, be1_ref,            # (1, E) f32  norm1
    g2_ref, be2_ref,            # (1, E) f32  norm2
    w1_ref, b1_ref,             # (E, 4E) bf16, (1, 4E) f32  pre-transposed linear1
    w2_ref, b2_ref,             # (4E, E) bf16, (1, E)  f32  pre-transposed linear2
    o_ref,                      # (Nb, L, E) output block
    *, num_heads, head_dim, nb, seq_len,
):
    H, Dh, L = num_heads, head_dim, seq_len
    E = H * Dh
    M = nb * L

    x = x_ref[...].astype(jnp.float32).reshape(M, E)

    def layernorm(v, g_ref, b_ref):
        mu = jnp.mean(v, axis=-1, keepdims=True)
        var = jnp.mean((v - mu) ** 2, axis=-1, keepdims=True)
        return (v - mu) * jax.lax.rsqrt(var + 1e-5) * g_ref[...] + b_ref[...]

    # ---------------- self-attention block (pre-norm) ----------------
    y = layernorm(x, g1_ref, be1_ref).astype(jnp.bfloat16)
    # Fused QKV projection (1/sqrt(Dh) already folded into the Q columns of weight + bias).
    # Cast to bf16 immediately: halves the (M, 3E) slab and its load/store traffic.
    qkv = (jnp.dot(y, w_in_ref[...], preferred_element_type=jnp.float32)
           + b_in_ref[...]).astype(jnp.bfloat16)

    def to_heads(off):
        # One head repack per Q/K/V for the whole block (no per-sequence Python loop):
        # (M, Dh) lane slices -> stack (H, M, Dh) -> (H*nb, L, Dh).  stack/concat plus
        # leading/second-minor reshapes are used instead of a 4-D transpose because they
        # lower reliably in Mosaic; the reshapes are free when L is a multiple of 8.
        hs = jnp.stack(
            [qkv[:, off + h * Dh: off + (h + 1) * Dh] for h in range(H)], axis=0)
        return hs.reshape(H, nb, L, Dh).reshape(H * nb, L, Dh)

    qh = to_heads(0)
    kh = to_heads(E)
    vh = to_heads(2 * E)

    # Fully (nb*H)-batched attention: one pair of MXU einsums + one softmax.
    # TODO(synk): flash-style KV-tiled online-softmax path for long L (full (B,L,L) scores here).
    s = jnp.einsum("bqd,bkd->bqk", qh, kh,
                   preferred_element_type=jnp.float32)          # (H*nb, L, L) f32
    s = s - jnp.max(s, axis=-1, keepdims=True)
    p = jnp.exp(s)
    p = p * pl.reciprocal(jnp.sum(p, axis=-1, keepdims=True), approx=True)
    oh = jnp.einsum("bqk,bkd->bqd", p.astype(jnp.bfloat16), vh,
                    preferred_element_type=jnp.float32)         # (H*nb, L, Dh) f32

    # In-value concat-heads: lane-dense (M, E) value, no VMEM scratch, no narrow stores.
    oh = oh.astype(jnp.bfloat16).reshape(H, nb, L, Dh).reshape(H, M, Dh)
    attn = jnp.concatenate([oh[h] for h in range(H)], axis=-1)  # (M, E) bf16

    sa = jnp.dot(attn, wo_ref[...], preferred_element_type=jnp.float32) + bo_ref[...]
    x = x + sa                      # dropout1 is identity in eval mode

    # ---------------- feed-forward block (pre-norm) ----------------
    y2 = layernorm(x, g2_ref, be2_ref).astype(jnp.bfloat16)
    h1 = jnp.maximum(
        jnp.dot(y2, w1_ref[...], preferred_element_type=jnp.float32) + b1_ref[...],
        0.0).astype(jnp.bfloat16)   # keep the (M, 4E) slab in bf16
    ff = jnp.dot(h1, w2_ref[...], preferred_element_type=jnp.float32) + b2_ref[...]
    x = x + ff                      # dropout / dropout2 are identity in eval mode

    o_ref[...] = x.reshape(nb, L, E).astype(o_ref.dtype)


def prepare_weights(params, num_heads):
    """One-time weight prep (hoisted out of the per-call path): fused QKV, pre-transposed
    bf16 matmul operands, 1/sqrt(Dh) folded into the Q columns of weight and bias."""
    p = params
    E = p["wq"].shape[0]
    scale = 1.0 / math.sqrt(E // num_heads)
    f32, bf16 = jnp.float32, jnp.bfloat16
    w_in_t = jnp.concatenate([p["wq"] * scale, p["wk"], p["wv"]], axis=0).T.astype(bf16)
    b_in = jnp.concatenate([p["bq"] * scale, p["bk"], p["bv"]], axis=1).astype(f32)
    return (
        w_in_t, b_in,
        p["wo"].T.astype(bf16), p["bo"].astype(f32),
        p["g1"].astype(f32), p["be1"].astype(f32),
        p["g2"].astype(f32), p["be2"].astype(f32),
        p["w1"].T.astype(bf16), p["b1"].astype(f32),
        p["w2"].T.astype(bf16), p["b2"].astype(f32),
    )


def _live_intermediate_bytes(nb, L, E, H):
    # Per-block live set: f32 x / sa / ff slabs, bf16 qkv + head copies + h1,
    # and the (nb*H, L, L) score / prob tensors.
    return nb * (L * E * 30 + H * L * L * 6)


def _pick_block_batch(N, L, E, H, vmem_cap):
    # Generation-aware live-VMEM budget (v7x: 64 MiB VMEM; v5e/v6e: 128 MiB).
    budget = (12 << 20) if vmem_cap <= (64 << 20) else (24 << 20)
    max_nb = max(1, N // 2)        # keep >= 2 grid steps so v7x's 2nd TensorCore gets work
    cands = [d for d in range(1, max_nb + 1) if N % d == 0]
    fitting = [d for d in cands if _live_intermediate_bytes(d, L, E, H) <= budget] or [1]
    for align in (256, 128):       # prefer M = nb*L that keeps the MXU shape-aligned
        aligned = [d for d in fitting if (d * L) % align == 0]
        if aligned:
            return max(aligned)
    return max(fitting)


def temporal_encoder_layer(x_lne, prepared_weights, *, num_heads, block_batch=None):
    """x_lne: (L, N, E) float32, matching the PyTorch seq-first convention (eval mode)."""
    L, N, E = x_lne.shape
    assert E % num_heads == 0
    head_dim = E // num_heads
    weight_args = tuple(prepared_weights)

    try:
        vmem_cap = int(pltpu.get_tpu_info().vmem_capacity_bytes)
    except Exception:
        vmem_cap = 128 << 20

    nb = block_batch if block_batch is not None else _pick_block_batch(
        N, L, E, num_heads, vmem_cap)
    assert N % nb == 0

    # Batch-major layout for the kernel (one-time transpose).
    x = jnp.transpose(x_lne, (1, 0, 2))   # (N, L, E)
    # TODO(synk): pad E to a multiple of 128 (with masked LayerNorm stats) for lane-dense
    # layouts when the embed dim is not 128-aligned; pad L to a multiple of 8 with key masking.

    kernel = functools.partial(
        _encoder_layer_kernel,
        num_heads=num_heads, head_dim=head_dim, nb=nb, seq_len=L)

    weight_bytes = sum(int(a.size) * a.dtype.itemsize for a in weight_args)
    block_bytes = nb * L * E * 4

    # Advisory cost estimate for the XLA scheduler.
    flops = int(N * (24 * L * E * E + 4 * L * L * E))
    transcendentals = int(N * num_heads * L * L)
    bytes_accessed = int(2 * N * L * E * 4 + weight_bytes * (N // nb))

    def run(single_buffer_weights):
        def rep(arr):   # replicated (non-tiled) weight operand spec
            idx = lambda b: (0,) * arr.ndim
            if single_buffer_weights:
                # Constant index map -> double buffering buys nothing; halve weight VMEM.
                return pl.BlockSpec(arr.shape, idx, pipeline_mode=pl.Buffered(1))
            return pl.BlockSpec(arr.shape, idx)

        weight_buf = 1 if single_buffer_weights else 2
        need = (weight_bytes * weight_buf + 4 * block_bytes
                + _live_intermediate_bytes(nb, L, E, num_heads) + (2 << 20))
        cap = (52 << 20) if vmem_cap <= (64 << 20) else (100 << 20)
        vmem_limit = int(min(max(2 * need, 16 << 20), cap))

        return pl.pallas_call(
            kernel,
            out_shape=jax.ShapeDtypeStruct((N, L, E), x.dtype),
            grid_spec=pltpu.PrefetchScalarGridSpec(
                num_scalar_prefetch=0,
                grid=(N // nb,),
                in_specs=[pl.BlockSpec((nb, L, E), lambda b: (b, 0, 0))]
                + [rep(a) for a in weight_args],
                out_specs=pl.BlockSpec((nb, L, E), lambda b: (b, 0, 0)),
            ),
            compiler_params=pltpu.CompilerParams(
                dimension_semantics=("parallel",),
                vmem_limit_bytes=vmem_limit,
            ),
            cost_estimate=pl.CostEstimate(
                flops=flops, transcendentals=transcendentals,
                bytes_accessed=bytes_accessed),
        )(x, *weight_args)

    # Single-buffer the resident weights only when double-buffering them would waste
    # meaningful VMEM (large E); fall back to the default pipeline if rejected.
    if weight_bytes > (4 << 20):
        try:
            out = run(True)
        except Exception:
            out = run(False)
    else:
        out = run(False)

    return jnp.transpose(out, (1, 0, 2))  # back to (L, N, E)


def init_params(key, embed_dim):
    """Deterministic synthetic parameters matching the module's __init__ shapes."""
    E = embed_dim
    ks = jax.random.split(key, 10)

    def w(k, shape, scale=0.05):
        return jax.random.normal(k, shape, jnp.float32) * scale

    in_proj_w = w(ks[0], (3 * E, E))   # nn.MultiheadAttention.in_proj_weight
    in_proj_b = w(ks[1], (3 * E,))     # nn.MultiheadAttention.in_proj_bias
    return {
        "wq": in_proj_w[:E], "wk": in_proj_w[E:2 * E], "wv": in_proj_w[2 * E:],
        "bq": in_proj_b[:E].reshape(1, E),
        "bk": in_proj_b[E:2 * E].reshape(1, E),
        "bv": in_proj_b[2 * E:].reshape(1, E),
        "wo": w(ks[2], (E, E)), "bo": w(ks[3], (E,)).reshape(1, E),
        "w1": w(ks[4], (4 * E, E)), "b1": w(ks[5], (4 * E,)).reshape(1, 4 * E),
        "w2": w(ks[6], (E, 4 * E)), "b2": w(ks[7], (E,)).reshape(1, E),
        "g1": jnp.ones((1, E), jnp.float32), "be1": jnp.zeros((1, E), jnp.float32),
        "g2": jnp.ones((1, E), jnp.float32), "be2": jnp.zeros((1, E), jnp.float32),
    }


def _reference(x_lne, p, num_heads):
    """Plain-JAX f32 reference of the PyTorch forward (eval mode) for validation."""
    L, N, E = x_lne.shape
    D = E // num_heads
    x = jnp.transpose(x_lne, (1, 0, 2))  # (N, L, E)

    def ln(v, g, b):
        mu = v.mean(-1, keepdims=True)
        var = ((v - mu) ** 2).mean(-1, keepdims=True)
        return (v - mu) / jnp.sqrt(var + 1e-5) * g + b

    y = ln(x, p["g1"], p["be1"])
    q = y @ p["wq"].T + p["bq"]
    k = y @ p["wk"].T + p["bk"]
    v = y @ p["wv"].T + p["bv"]
    qh = q.reshape(N, L, num_heads, D).transpose(0, 2, 1, 3) / math.sqrt(D)
    kh = k.reshape(N, L, num_heads, D).transpose(0, 2, 1, 3)
    vh = v.reshape(N, L, num_heads, D).transpose(0, 2, 1, 3)
    attn = jax.nn.softmax(jnp.einsum("nhld,nhmd->nhlm", qh, kh), axis=-1)
    o = jnp.einsum("nhlm,nhmd->nhld", attn, vh).transpose(0, 2, 1, 3).reshape(N, L, E)
    x = x + (o @ p["wo"].T + p["bo"])
    y2 = ln(x, p["g2"], p["be2"])
    x = x + (jnp.maximum(y2 @ p["w1"].T + p["b1"], 0.0) @ p["w2"].T + p["b2"])
    return jnp.transpose(x, (1, 0, 2))


if __name__ == "__main__":
    L, N, E, H = 8, 2, 32, 8  # seq, batch, embed_dim, num_heads
    key = jax.random.PRNGKey(0)
    kx, kp = jax.random.split(key)
    x = jax.random.normal(kx, (L, N, E), jnp.float32)
    params = init_params(kp, E)
    prepared = prepare_weights(params, H)   # one-time weight prep, hoisted out of the call

    out = temporal_encoder_layer(x, prepared, num_heads=H)
    out = jax.block_until_ready(out)

    ref = _reference(x, params, H)
    assert out.shape == (L, N, E)
    # bf16 matmul operands (f32 accumulation) + approx softmax reciprocal -> relaxed tolerance.
    assert jnp.allclose(out, ref, atol=2e-2, rtol=2e-2)
    print("KERNEL_OK")
</pallas_src>

<mosaic_0001>
module attributes {stable_mosaic.version = 11 : i64} {
  func.func @_encoder_layer_kernel(%arg0: i32, %arg1: memref<1x8x32xf32, #tpu.memory_space<vmem>>, %arg2: memref<32x96xbf16, #tpu.memory_space<vmem>>, %arg3: memref<1x96xf32, #tpu.memory_space<vmem>>, %arg4: memref<32x32xbf16, #tpu.memory_space<vmem>>, %arg5: memref<1x32xf32, #tpu.memory_space<vmem>>, %arg6: memref<1x32xf32, #tpu.memory_space<vmem>>, %arg7: memref<1x32xf32, #tpu.memory_space<vmem>>, %arg8: memref<1x32xf32, #tpu.memory_space<vmem>>, %arg9: memref<1x32xf32, #tpu.memory_space<vmem>>, %arg10: memref<32x128xbf16, #tpu.memory_space<vmem>>, %arg11: memref<1x128xf32, #tpu.memory_space<vmem>>, %arg12: memref<128x32xbf16, #tpu.memory_space<vmem>>, %arg13: memref<1x32xf32, #tpu.memory_space<vmem>>, %arg14: memref<1x8x32xf32, #tpu.memory_space<vmem>>) attributes {dimension_semantics = [#tpu.dimension_semantics<parallel>], iteration_bounds = array<i64: 2>, scalar_prefetch = 0 : i64, scratch_operands = 0 : i64, tpu.core_type = #tpu.core_type<tc>, window_params = [{transform_indices = @transform_0, window_bounds = array<i64: 1, 8, 32>}, {pipeline_mode = #tpu.pipeline_mode<synchronous>, transform_indices = @transform_1, window_bounds = array<i64: 32, 96>}, {pipeline_mode = #tpu.pipeline_mode<synchronous>, transform_indices = @transform_2, window_bounds = array<i64: 1, 96>}, {pipeline_mode = #tpu.pipeline_mode<synchronous>, transform_indices = @transform_3, window_bounds = array<i64: 32, 32>}, {pipeline_mode = #tpu.pipeline_mode<synchronous>, transform_indices = @transform_4, window_bounds = array<i64: 1, 32>}, {pipeline_mode = #tpu.pipeline_mode<synchronous>, transform_indices = @transform_5, window_bounds = array<i64: 1, 32>}, {pipeline_mode = #tpu.pipeline_mode<synchronous>, transform_indices = @transform_6, window_bounds = array<i64: 1, 32>}, {pipeline_mode = #tpu.pipeline_mode<synchronous>, transform_indices = @transform_7, window_bounds = array<i64: 1, 32>}, {pipeline_mode = #tpu.pipeline_mode<synchronous>, transform_indices = @transform_8, window_bounds = array<i64: 1, 32>}, {pipeline_mode = #tpu.pipeline_mode<synchronous>, transform_indices = @transform_9, window_bounds = array<i64: 32, 128>}, {pipeline_mode = #tpu.pipeline_mode<synchronous>, transform_indices = @transform_10, window_bounds = array<i64: 1, 128>}, {pipeline_mode = #tpu.pipeline_mode<synchronous>, transform_indices = @transform_11, window_bounds = array<i64: 128, 32>}, {pipeline_mode = #tpu.pipeline_mode<synchronous>, transform_indices = @transform_12, window_bounds = array<i64: 1, 32>}, {transform_indices = @transform_13, window_bounds = array<i64: 1, 8, 32>}]} {
    %c0 = arith.constant 0 : index
    %c0_0 = arith.constant 0 : index
    %c0_1 = arith.constant 0 : index
    %0 = vector.load %arg1[%c0, %c0_0, %c0_1] : memref<1x8x32xf32, #tpu.memory_space<vmem>>, vector<1x8x32xf32>
    %1 = vector.shape_cast %0 : vector<1x8x32xf32> to vector<8x32xf32>
    %cst = arith.constant dense<0.000000e+00> : vector<8xf32>
    %2 = vector.multi_reduction <add>, %1, %cst [1] : vector<8x32xf32> to vector<8xf32>
    %3 = vector.shape_cast %2 : vector<8xf32> to vector<8x1xf32>
    %cst_2 = arith.constant 3.200000e+01 : f32
    %4 = vector.broadcast %cst_2 : f32 to vector<8x1xf32>
    %5 = arith.divf %3, %4 : vector<8x1xf32>
    %6 = vector.broadcast %5 : vector<8x1xf32> to vector<8x32xf32>
    %7 = arith.subf %1, %6 : vector<8x32xf32>
    %8 = arith.mulf %7, %7 : vector<8x32xf32>
    %cst_3 = arith.constant dense<0.000000e+00> : vector<8xf32>
    %9 = vector.multi_reduction <add>, %8, %cst_3 [1] : vector<8x32xf32> to vector<8xf32>
    %10 = vector.shape_cast %9 : vector<8xf32> to vector<8x1xf32>
    %cst_4 = arith.constant 3.200000e+01 : f32
    %11 = vector.broadcast %cst_4 : f32 to vector<8x1xf32>
    %12 = arith.divf %10, %11 : vector<8x1xf32>
    %13 = vector.broadcast %5 : vector<8x1xf32> to vector<8x32xf32>
    %14 = arith.subf %1, %13 : vector<8x32xf32>
    %cst_5 = arith.constant 9.99999974E-6 : f32
    %15 = vector.broadcast %cst_5 : f32 to vector<8x1xf32>
    %16 = arith.addf %12, %15 : vector<8x1xf32>
    %17 = math.rsqrt %16 : vector<8x1xf32>
    %18 = vector.broadcast %17 : vector<8x1xf32> to vector<8x32xf32>
    %19 = arith.mulf %14, %18 : vector<8x32xf32>
    %c0_6 = arith.constant 0 : index
    %c0_7 = arith.constant 0 : index
    %20 = vector.load %arg6[%c0_6, %c0_7] : memref<1x32xf32, #tpu.memory_space<vmem>>, vector<1x32xf32>
    %21 = vector.broadcast %20 : vector<1x32xf32> to vector<8x32xf32>
    %22 = arith.mulf %19, %21 : vector<8x32xf32>
    %c0_8 = arith.constant 0 : index
    %c0_9 = arith.constant 0 : index
    %23 = vector.load %arg7[%c0_8, %c0_9] : memref<1x32xf32, #tpu.memory_space<vmem>>, vector<1x32xf32>
    %24 = vector.broadcast %23 : vector<1x32xf32> to vector<8x32xf32>
    %25 = arith.addf %22, %24 : vector<8x32xf32>
    %26 = arith.truncf %25 : vector<8x32xf32> to vector<8x32xbf16>
    %c0_10 = arith.constant 0 : index
    %c0_11 = arith.constant 0 : index
    %27 = vector.load %arg2[%c0_10, %c0_11] : memref<32x96xbf16, #tpu.memory_space<vmem>>, vector<32x96xbf16>
    %cst_12 = arith.constant dense<0.000000e+00> : vector<8x96xf32>
    %28 = tpu.matmul %26, %27, %cst_12 {dimension_numbers = #tpu.dot_dimension_numbers<[1], [0], [0], [1], [0, 0, 1, 1], [], []>} : vector<8x32xbf16>, vector<32x96xbf16>, vector<8x96xf32> -> vector<8x96xf32>
    %c0_13 = arith.constant 0 : index
    %c0_14 = arith.constant 0 : index
    %29 = vector.load %arg3[%c0_13, %c0_14] : memref<1x96xf32, #tpu.memory_space<vmem>>, vector<1x96xf32>
    %30 = vector.broadcast %29 : vector<1x96xf32> to vector<8x96xf32>
    %31 = arith.addf %28, %30 : vector<8x96xf32>
    %32 = arith.truncf %31 : vector<8x96xf32> to vector<8x96xbf16>
    %33 = vector.extract_strided_slice %32 {offsets = [0, 0], sizes = [8, 4], strides = [1, 1]} : vector<8x96xbf16> to vector<8x4xbf16>
    %34 = vector.extract_strided_slice %32 {offsets = [0, 4], sizes = [8, 4], strides = [1, 1]} : vector<8x96xbf16> to vector<8x4xbf16>
    %35 = vector.extract_strided_slice %32 {offsets = [0, 8], sizes = [8, 4], strides = [1, 1]} : vector<8x96xbf16> to vector<8x4xbf16>
    %36 = vector.extract_strided_slice %32 {offsets = [0, 12], sizes = [8, 4], strides = [1, 1]} : vector<8x96xbf16> to vector<8x4xbf16>
    %37 = vector.extract_strided_slice %32 {offsets = [0, 16], sizes = [8, 4], strides = [1, 1]} : vector<8x96xbf16> to vector<8x4xbf16>
    %38 = vector.extract_strided_slice %32 {offsets = [0, 20], sizes = [8, 4], strides = [1, 1]} : vector<8x96xbf16> to vector<8x4xbf16>
    %39 = vector.extract_strided_slice %32 {offsets = [0, 24], sizes = [8, 4], strides = [1, 1]} : vector<8x96xbf16> to vector<8x4xbf16>
    %40 = vector.extract_strided_slice %32 {offsets = [0, 28], sizes = [8, 4], strides = [1, 1]} : vector<8x96xbf16> to vector<8x4xbf16>
    %41 = vector.shape_cast %33 : vector<8x4xbf16> to vector<1x8x4xbf16>
    %42 = vector.shape_cast %34 : vector<8x4xbf16> to vector<1x8x4xbf16>
    %43 = vector.shape_cast %35 : vector<8x4xbf16> to vector<1x8x4xbf16>
    %44 = vector.shape_cast %36 : vector<8x4xbf16> to vector<1x8x4xbf16>
    %45 = vector.shape_cast %37 : vector<8x4xbf16> to vector<1x8x4xbf16>
    %46 = vector.shape_cast %38 : vector<8x4xbf16> to vector<1x8x4xbf16>
    %47 = vector.shape_cast %39 : vector<8x4xbf16> to vector<1x8x4xbf16>
    %48 = vector.shape_cast %40 : vector<8x4xbf16> to vector<1x8x4xbf16>
    %49 = tpu.concatenate %41, %42, %43, %44, %45, %46, %47, %48 in 0 : vector<1x8x4xbf16>, vector<1x8x4xbf16>, vector<1x8x4xbf16>, vector<1x8x4xbf16>, vector<1x8x4xbf16>, vector<1x8x4xbf16>, vector<1x8x4xbf16>, vector<1x8x4xbf16> -> vector<8x8x4xbf16>
    %50 = vector.shape_cast %49 : vector<8x8x4xbf16> to vector<8x1x8x4xbf16>
    %51 = vector.shape_cast %50 : vector<8x1x8x4xbf16> to vector<8x8x4xbf16>
    %52 = vector.extract_strided_slice %32 {offsets = [0, 32], sizes = [8, 4], strides = [1, 1]} : vector<8x96xbf16> to vector<8x4xbf16>
    %53 = vector.extract_strided_slice %32 {offsets = [0, 36], sizes = [8, 4], strides = [1, 1]} : vector<8x96xbf16> to vector<8x4xbf16>
    %54 = vector.extract_strided_slice %32 {offsets = [0, 40], sizes = [8, 4], strides = [1, 1]} : vector<8x96xbf16> to vector<8x4xbf16>
    %55 = vector.extract_strided_slice %32 {offsets = [0, 44], sizes = [8, 4], strides = [1, 1]} : vector<8x96xbf16> to vector<8x4xbf16>
    %56 = vector.extract_strided_slice %32 {offsets = [0, 48], sizes = [8, 4], strides = [1, 1]} : vector<8x96xbf16> to vector<8x4xbf16>
    %57 = vector.extract_strided_slice %32 {offsets = [0, 52], sizes = [8, 4], strides = [1, 1]} : vector<8x96xbf16> to vector<8x4xbf16>
    %58 = vector.extract_strided_slice %32 {offsets = [0, 56], sizes = [8, 4], strides = [1, 1]} : vector<8x96xbf16> to vector<8x4xbf16>
    %59 = vector.extract_strided_slice %32 {offsets = [0, 60], sizes = [8, 4], strides = [1, 1]} : vector<8x96xbf16> to vector<8x4xbf16>
    %60 = vector.shape_cast %52 : vector<8x4xbf16> to vector<1x8x4xbf16>
    %61 = vector.shape_cast %53 : vector<8x4xbf16> to vector<1x8x4xbf16>
    %62 = vector.shape_cast %54 : vector<8x4xbf16> to vector<1x8x4xbf16>
    %63 = vector.shape_cast %55 : vector<8x4xbf16> to vector<1x8x4xbf16>
    %64 = vector.shape_cast %56 : vector<8x4xbf16> to vector<1x8x4xbf16>
    %65 = vector.shape_cast %57 : vector<8x4xbf16> to vector<1x8x4xbf16>
    %66 = vector.shape_cast %58 : vector<8x4xbf16> to vector<1x8x4xbf16>
    %67 = vector.shape_cast %59 : vector<8x4xbf16> to vector<1x8x4xbf16>
    %68 = tpu.concatenate %60, %61, %62, %63, %64, %65, %66, %67 in 0 : vector<1x8x4xbf16>, vector<1x8x4xbf16>, vector<1x8x4xbf16>, vector<1x8x4xbf16>, vector<1x8x4xbf16>, vector<1x8x4xbf16>, vector<1x8x4xbf16>, vector<1x8x4xbf16> -> vector<8x8x4xbf16>
    %69 = vector.shape_cast %68 : vector<8x8x4xbf16> to vector<8x1x8x4xbf16>
    %70 = vector.shape_cast %69 : vector<8x1x8x4xbf16> to vector<8x8x4xbf16>
    %71 = vector.extract_strided_slice %32 {offsets = [0, 64], sizes = [8, 4], strides = [1, 1]} : vector<8x96xbf16> to vector<8x4xbf16>
    %72 = vector.extract_strided_slice %32 {offsets = [0, 68], sizes = [8, 4], strides = [1, 1]} : vector<8x96xbf16> to vector<8x4xbf16>
    %73 = vector.extract_strided_slice %32 {offsets = [0, 72], sizes = [8, 4], strides = [1, 1]} : vector<8x96xbf16> to vector<8x4xbf16>
    %74 = vector.extract_strided_slice %32 {offsets = [0, 76], sizes = [8, 4], strides = [1, 1]} : vector<8x96xbf16> to vector<8x4xbf16>
    %75 = vector.extract_strided_slice %32 {offsets = [0, 80], sizes = [8, 4], strides = [1, 1]} : vector<8x96xbf16> to vector<8x4xbf16>
    %76 = vector.extract_strided_slice %32 {offsets = [0, 84], sizes = [8, 4], strides = [1, 1]} : vector<8x96xbf16> to vector<8x4xbf16>
    %77 = vector.extract_strided_slice %32 {offsets = [0, 88], sizes = [8, 4], strides = [1, 1]} : vector<8x96xbf16> to vector<8x4xbf16>
    %78 = vector.extract_strided_slice %32 {offsets = [0, 92], sizes = [8, 4], strides = [1, 1]} : vector<8x96xbf16> to vector<8x4xbf16>
    %79 = vector.shape_cast %71 : vector<8x4xbf16> to vector<1x8x4xbf16>
    %80 = vector.shape_cast %72 : vector<8x4xbf16> to vector<1x8x4xbf16>
    %81 = vector.shape_cast %73 : vector<8x4xbf16> to vector<1x8x4xbf16>
    %82 = vector.shape_cast %74 : vector<8x4xbf16> to vector<1x8x4xbf16>
    %83 = vector.shape_cast %75 : vector<8x4xbf16> to vector<1x8x4xbf16>
    %84 = vector.shape_cast %76 : vector<8x4xbf16> to vector<1x8x4xbf16>
    %85 = vector.shape_cast %77 : vector<8x4xbf16> to vector<1x8x4xbf16>
    %86 = vector.shape_cast %78 : vector<8x4xbf16> to vector<1x8x4xbf16>
    %87 = tpu.concatenate %79, %80, %81, %82, %83, %84, %85, %86 in 0 : vector<1x8x4xbf16>, vector<1x8x4xbf16>, vector<1x8x4xbf16>, vector<1x8x4xbf16>, vector<1x8x4xbf16>, vector<1x8x4xbf16>, vector<1x8x4xbf16>, vector<1x8x4xbf16> -> vector<8x8x4xbf16>
    %88 = vector.shape_cast %87 : vector<8x8x4xbf16> to vector<8x1x8x4xbf16>
    %89 = vector.shape_cast %88 : vector<8x1x8x4xbf16> to vector<8x8x4xbf16>
    "tpu.trace_start"() <{level = 10 : i32, message = "bqd,bkd->bqk"}> : () -> ()
    %cst_15 = arith.constant dense<0.000000e+00> : vector<8x8x8xf32>
    %90 = tpu.matmul %51, %70, %cst_15 {dimension_numbers = #tpu.dot_dimension_numbers<[2], [2], [1], [1], [0, 0, 0, 1, 1, 1], [0], [0]>} : vector<8x8x4xbf16>, vector<8x8x4xbf16>, vector<8x8x8xf32> -> vector<8x8x8xf32>
    "tpu.trace_stop"() : () -> ()
    %cst_16 = arith.constant dense<0xFF800000> : vector<8x8xf32>
    %91 = vector.multi_reduction <maximumf>, %90, %cst_16 [2] : vector<8x8x8xf32> to vector<8x8xf32>
    %92 = vector.shape_cast %91 : vector<8x8xf32> to vector<8x8x1xf32>
    %93 = vector.broadcast %92 : vector<8x8x1xf32> to vector<8x8x8xf32>
    %94 = arith.subf %90, %93 : vector<8x8x8xf32>
    %95 = math.exp %94 : vector<8x8x8xf32>
    %cst_17 = arith.constant dense<0.000000e+00> : vector<8x8xf32>
    %96 = vector.multi_reduction <add>, %95, %cst_17 [2] : vector<8x8x8xf32> to vector<8x8xf32>
    %97 = vector.shape_cast %96 : vector<8x8xf32> to vector<8x8x1xf32>
    %98 = tpu.reciprocal %97 {approx = true} : vector<8x8x1xf32> -> vector<8x8x1xf32>
    %99 = vector.broadcast %98 : vector<8x8x1xf32> to vector<8x8x8xf32>
    %100 = arith.mulf %95, %99 : vector<8x8x8xf32>
    %101 = arith.truncf %100 : vector<8x8x8xf32> to vector<8x8x8xbf16>
    "tpu.trace_start"() <{level = 10 : i32, message = "bqk,bkd->bqd"}> : () -> ()
    %cst_18 = arith.constant dense<0.000000e+00> : vector<8x8x4xf32>
    %102 = tpu.matmul %101, %89, %cst_18 {dimension_numbers = #tpu.dot_dimension_numbers<[2], [1], [1], [2], [0, 0, 0, 1, 1, 2], [0], [0]>} : vector<8x8x8xbf16>, vector<8x8x4xbf16>, vector<8x8x4xf32> -> vector<8x8x4xf32>
    "tpu.trace_stop"() : () -> ()
    %103 = arith.truncf %102 : vector<8x8x4xf32> to vector<8x8x4xbf16>
    %104 = vector.shape_cast %103 : vector<8x8x4xbf16> to vector<8x1x8x4xbf16>
    %105 = vector.shape_cast %104 : vector<8x1x8x4xbf16> to vector<8x8x4xbf16>
    %106 = vector.extract_strided_slice %105 {offsets = [0, 0, 0], sizes = [1, 8, 4], strides = [1, 1, 1]} : vector<8x8x4xbf16> to vector<1x8x4xbf16>
    %107 = vector.shape_cast %106 : vector<1x8x4xbf16> to vector<8x4xbf16>
    %108 = vector.extract_strided_slice %105 {offsets = [1, 0, 0], sizes = [1, 8, 4], strides = [1, 1, 1]} : vector<8x8x4xbf16> to vector<1x8x4xbf16>
    %109 = vector.shape_cast %108 : vector<1x8x4xbf16> to vector<8x4xbf16>
    %110 = vector.extract_strided_slice %105 {offsets = [2, 0, 0], sizes = [1, 8, 4], strides = [1, 1, 1]} : vector<8x8x4xbf16> to vector<1x8x4xbf16>
    %111 = vector.shape_cast %110 : vector<1x8x4xbf16> to vector<8x4xbf16>
    %112 = vector.extract_strided_slice %105 {offsets = [3, 0, 0], sizes = [1, 8, 4], strides = [1, 1, 1]} : vector<8x8x4xbf16> to vector<1x8x4xbf16>
    %113 = vector.shape_cast %112 : vector<1x8x4xbf16> to vector<8x4xbf16>
    %114 = vector.extract_strided_slice %105 {offsets = [4, 0, 0], sizes = [1, 8, 4], strides = [1, 1, 1]} : vector<8x8x4xbf16> to vector<1x8x4xbf16>
    %115 = vector.shape_cast %114 : vector<1x8x4xbf16> to vector<8x4xbf16>
    %116 = vector.extract_strided_slice %105 {offsets = [5, 0, 0], sizes = [1, 8, 4], strides = [1, 1, 1]} : vector<8x8x4xbf16> to vector<1x8x4xbf16>
    %117 = vector.shape_cast %116 : vector<1x8x4xbf16> to vector<8x4xbf16>
    %118 = vector.extract_strided_slice %105 {offsets = [6, 0, 0], sizes = [1, 8, 4], strides = [1, 1, 1]} : vector<8x8x4xbf16> to vector<1x8x4xbf16>
    %119 = vector.shape_cast %118 : vector<1x8x4xbf16> to vector<8x4xbf16>
    %120 = vector.extract_strided_slice %105 {offsets = [7, 0, 0], sizes = [1, 8, 4], strides = [1, 1, 1]} : vector<8x8x4xbf16> to vector<1x8x4xbf16>
    %121 = vector.shape_cast %120 : vector<1x8x4xbf16> to vector<8x4xbf16>
    %122 = tpu.concatenate %107, %109, %111, %113, %115, %117, %119, %121 in 1 : vector<8x4xbf16>, vector<8x4xbf16>, vector<8x4xbf16>, vector<8x4xbf16>, vector<8x4xbf16>, vector<8x4xbf16>, vector<8x4xbf16>, vector<8x4xbf16> -> vector<8x32xbf16>
    %c0_19 = arith.constant 0 : index
    %c0_20 = arith.constant 0 : index
    %123 = vector.load %arg4[%c0_19, %c0_20] : memref<32x32xbf16, #tpu.memory_space<vmem>>, vector<32x32xbf16>
    %cst_21 = arith.constant dense<0.000000e+00> : vector<8x32xf32>
    %124 = tpu.matmul %122, %123, %cst_21 {dimension_numbers = #tpu.dot_dimension_numbers<[1], [0], [0], [1], [0, 0, 1, 1], [], []>} : vector<8x32xbf16>, vector<32x32xbf16>, vector<8x32xf32> -> vector<8x32xf32>
    %c0_22 = arith.constant 0 : index
    %c0_23 = arith.constant 0 : index
    %125 = vector.load %arg5[%c0_22, %c0_23] : memref<1x32xf32, #tpu.memory_space<vmem>>, vector<1x32xf32>
    %126 = vector.broadcast %125 : vector<1x32xf32> to vector<8x32xf32>
    %127 = arith.addf %124, %126 : vector<8x32xf32>
    %128 = arith.addf %1, %127 : vector<8x32xf32>
    %cst_24 = arith.constant dense<0.000000e+00> : vector<8xf32>
    %129 = vector.multi_reduction <add>, %128, %cst_24 [1] : vector<8x32xf32> to vector<8xf32>
    %130 = vector.shape_cast %129 : vector<8xf32> to vector<8x1xf32>
    %cst_25 = arith.constant 3.200000e+01 : f32
    %131 = vector.broadcast %cst_25 : f32 to vector<8x1xf32>
    %132 = arith.divf %130, %131 : vector<8x1xf32>
    %133 = vector.broadcast %132 : vector<8x1xf32> to vector<8x32xf32>
    %134 = arith.subf %128, %133 : vector<8x32xf32>
    %135 = arith.mulf %134, %134 : vector<8x32xf32>
    %cst_26 = arith.constant dense<0.000000e+00> : vector<8xf32>
    %136 = vector.multi_reduction <add>, %135, %cst_26 [1] : vector<8x32xf32> to vector<8xf32>
    %137 = vector.shape_cast %136 : vector<8xf32> to vector<8x1xf32>
    %cst_27 = arith.constant 3.200000e+01 : f32
    %138 = vector.broadcast %cst_27 : f32 to vector<8x1xf32>
    %139 = arith.divf %137, %138 : vector<8x1xf32>
    %140 = vector.broadcast %132 : vector<8x1xf32> to vector<8x32xf32>
    %141 = arith.subf %128, %140 : vector<8x32xf32>
    %cst_28 = arith.constant 9.99999974E-6 : f32
    %142 = vector.broadcast %cst_28 : f32 to vector<8x1xf32>
    %143 = arith.addf %139, %142 : vector<8x1xf32>
    %144 = math.rsqrt %143 : vector<8x1xf32>
    %145 = vector.broadcast %144 : vector<8x1xf32> to vector<8x32xf32>
    %146 = arith.mulf %141, %145 : vector<8x32xf32>
    %c0_29 = arith.constant 0 : index
    %c0_30 = arith.constant 0 : index
    %147 = vector.load %arg8[%c0_29, %c0_30] : memref<1x32xf32, #tpu.memory_space<vmem>>, vector<1x32xf32>
    %148 = vector.broadcast %147 : vector<1x32xf32> to vector<8x32xf32>
    %149 = arith.mulf %146, %148 : vector<8x32xf32>
    %c0_31 = arith.constant 0 : index
    %c0_32 = arith.constant 0 : index
    %150 = vector.load %arg9[%c0_31, %c0_32] : memref<1x32xf32, #tpu.memory_space<vmem>>, vector<1x32xf32>
    %151 = vector.broadcast %150 : vector<1x32xf32> to vector<8x32xf32>
    %152 = arith.addf %149, %151 : vector<8x32xf32>
    %153 = arith.truncf %152 : vector<8x32xf32> to vector<8x32xbf16>
    %c0_33 = arith.constant 0 : index
    %c0_34 = arith.constant 0 : index
    %154 = vector.load %arg10[%c0_33, %c0_34] : memref<32x128xbf16, #tpu.memory_space<vmem>>, vector<32x128xbf16>
    %cst_35 = arith.constant dense<0.000000e+00> : vector<8x128xf32>
    %155 = tpu.matmul %153, %154, %cst_35 {dimension_numbers = #tpu.dot_dimension_numbers<[1], [0], [0], [1], [0, 0, 1, 1], [], []>} : vector<8x32xbf16>, vector<32x128xbf16>, vector<8x128xf32> -> vector<8x128xf32>
    %c0_36 = arith.constant 0 : index
    %c0_37 = arith.constant 0 : index
    %156 = vector.load %arg11[%c0_36, %c0_37] : memref<1x128xf32, #tpu.memory_space<vmem>>, vector<1x128xf32>
    %157 = vector.broadcast %156 : vector<1x128xf32> to vector<8x128xf32>
    %158 = arith.addf %155, %157 : vector<8x128xf32>
    %cst_38 = arith.constant 0.000000e+00 : f32
    %159 = vector.broadcast %cst_38 : f32 to vector<8x128xf32>
    %160 = arith.maximumf %158, %159 : vector<8x128xf32>
    %161 = arith.truncf %160 : vector<8x128xf32> to vector<8x128xbf16>
    %c0_39 = arith.constant 0 : index
    %c0_40 = arith.constant 0 : index
    %162 = vector.load %arg12[%c0_39, %c0_40] : memref<128x32xbf16, #tpu.memory_space<vmem>>, vector<128x32xbf16>
    %cst_41 = arith.constant dense<0.000000e+00> : vector<8x32xf32>
    %163 = tpu.matmul %161, %162, %cst_41 {dimension_numbers = #tpu.dot_dimension_numbers<[1], [0], [0], [1], [0, 0, 1, 1], [], []>} : vector<8x128xbf16>, vector<128x32xbf16>, vector<8x32xf32> -> vector<8x32xf32>
    %c0_42 = arith.constant 0 : index
    %c0_43 = arith.constant 0 : index
    %164 = vector.load %arg13[%c0_42, %c0_43] : memref<1x32xf32, #tpu.memory_space<vmem>>, vector<1x32xf32>
    %165 = vector.broadcast %164 : vector<1x32xf32> to vector<8x32xf32>
    %166 = arith.addf %163, %165 : vector<8x32xf32>
    %167 = arith.addf %128, %166 : vector<8x32xf32>
    %168 = vector.shape_cast %167 : vector<8x32xf32> to vector<1x8x32xf32>
    %c0_44 = arith.constant 0 : index
    %c0_45 = arith.constant 0 : index
    %c0_46 = arith.constant 0 : index
    %169 = vector.load %arg14[%c0_44, %c0_45, %c0_46] : memref<1x8x32xf32, #tpu.memory_space<vmem>>, vector<1x8x32xf32>
    tpu.vector_store %arg14[%c0_44, %c0_45, %c0_46], %168 {strides = array<i32>} : memref<1x8x32xf32, #tpu.memory_space<vmem>>, vector<1x8x32xf32>,
    return
  }
  func.func @transform_0(%arg0: i32) -> (i32, i32, i32) {
    %c0_i32 = arith.constant 0 : i32
    %c0_i32_0 = arith.constant 0 : i32
    %c0_i32_1 = arith.constant 0 : i32
    return %arg0, %c0_i32, %c0_i32_0 : i32, i32, i32
  }
  func.func @transform_1(%arg0: i32) -> (i32, i32) {
    %c0_i32 = arith.constant 0 : i32
    %c0_i32_0 = arith.constant 0 : i32
    %c0_i32_1 = arith.constant 0 : i32
    return %c0_i32, %c0_i32_0 : i32, i32
  }
  func.func @transform_2(%arg0: i32) -> (i32, i32) {
    %c0_i32 = arith.constant 0 : i32
    %c0_i32_0 = arith.constant 0 : i32
    %c0_i32_1 = arith.constant 0 : i32
    return %c0_i32, %c0_i32_0 : i32, i32
  }
  func.func @transform_3(%arg0: i32) -> (i32, i32) {
    %c0_i32 = arith.constant 0 : i32
    %c0_i32_0 = arith.constant 0 : i32
    %c0_i32_1 = arith.constant 0 : i32
    return %c0_i32, %c0_i32_0 : i32, i32
  }
  func.func @transform_4(%arg0: i32) -> (i32, i32) {
    %c0_i32 = arith.constant 0 : i32
    %c0_i32_0 = arith.constant 0 : i32
    %c0_i32_1 = arith.constant 0 : i32
    return %c0_i32, %c0_i32_0 : i32, i32
  }
  func.func @transform_5(%arg0: i32) -> (i32, i32) {
    %c0_i32 = arith.constant 0 : i32
    %c0_i32_0 = arith.constant 0 : i32
    %c0_i32_1 = arith.constant 0 : i32
    return %c0_i32, %c0_i32_0 : i32, i32
  }
  func.func @transform_6(%arg0: i32) -> (i32, i32) {
    %c0_i32 = arith.constant 0 : i32
    %c0_i32_0 = arith.constant 0 : i32
    %c0_i32_1 = arith.constant 0 : i32
    return %c0_i32, %c0_i32_0 : i32, i32
  }
  func.func @transform_7(%arg0: i32) -> (i32, i32) {
    %c0_i32 = arith.constant 0 : i32
    %c0_i32_0 = arith.constant 0 : i32
    %c0_i32_1 = arith.constant 0 : i32
    return %c0_i32, %c0_i32_0 : i32, i32
  }
  func.func @transform_8(%arg0: i32) -> (i32, i32) {
    %c0_i32 = arith.constant 0 : i32
    %c0_i32_0 = arith.constant 0 : i32
    %c0_i32_1 = arith.constant 0 : i32
    return %c0_i32, %c0_i32_0 : i32, i32
  }
  func.func @transform_9(%arg0: i32) -> (i32, i32) {
    %c0_i32 = arith.constant 0 : i32
    %c0_i32_0 = arith.constant 0 : i32
    %c0_i32_1 = arith.constant 0 : i32
    return %c0_i32, %c0_i32_0 : i32, i32
  }
  func.func @transform_10(%arg0: i32) -> (i32, i32) {
    %c0_i32 = arith.constant 0 : i32
    %c0_i32_0 = arith.constant 0 : i32
    %c0_i32_1 = arith.constant 0 : i32
    return %c0_i32, %c0_i32_0 : i32, i32
  }
  func.func @transform_11(%arg0: i32) -> (i32, i32) {
    %c0_i32 = arith.constant 0 : i32
    %c0_i32_0 = arith.constant 0 : i32
    %c0_i32_1 = arith.constant 0 : i32
    return %c0_i32, %c0_i32_0 : i32, i32
  }
  func.func @transform_12(%arg0: i32) -> (i32, i32) {
    %c0_i32 = arith.constant 0 : i32
    %c0_i32_0 = arith.constant 0 : i32
    %c0_i32_1 = arith.constant 0 : i32
    return %c0_i32, %c0_i32_0 : i32, i32
  }
  func.func @transform_13(%arg0: i32) -> (i32, i32, i32) {
    %c0_i32 = arith.constant 0 : i32
    %c0_i32_0 = arith.constant 0 : i32
    %c0_i32_1 = arith.constant 0 : i32
    return %arg0, %c0_i32, %c0_i32_0 : i32, i32, i32
  }
}

</mosaic_0001>

<bundles_post_ra>
// kernel: tpu_custom_call.1
= control target key start
LH: loop header
LB: loop body
LE: loop exit
PB: predicated region body
PF: predicated region fallthrough
CT: control target
= control target key end

     0   :  { %s2710_s0 = inlined_call_operand.vmem [shape: f32[2,8,32], index: 0, kind: input, shape index: {}]   ;;  %s2711_s1 = inlined_call_operand.vmem [shape: bf16[32,96], index: 1, kind: input, shape index: {}]   ;;  %s2712_s2 = inlined_call_operand.vmem [shape: f32[1,96], index: 2, kind: input, shape index: {}]   ;;  %s2713_s3 = inlined_call_operand.vmem [shape: bf16[32,32], index: 3, kind: input, shape index: {}]   ;;  %s2714_s4 = inlined_call_operand.vmem [shape: f32[1,32], index: 4, kind: input, shape index: {}]   ;;  %s2715_s5 = inlined_call_operand.vmem [shape: f32[1,32], index: 5, kind: input, shape index: {}]   ;;  %s2716_s6 = inlined_call_operand.vmem [shape: f32[1,32], index: 6, kind: input, shape index: {}]   ;;  %s2717_s7 = inlined_call_operand.vmem [shape: f32[1,32], index: 7, kind: input, shape index: {}]   ;;  %s2718_s8 = inlined_call_operand.vmem [shape: f32[1,32], index: 8, kind: input, shape index: {}]   ;;  %s2719_s9 = inlined_call_operand.vmem [shape: bf16[32,128], index: 9, kind: input, shape index: {}]   ;;  %s2720_s10 = inlined_call_operand.vmem [shape: f32[1,128], index: 10, kind: input, shape index: {}]   ;;  %s2721_s11 = inlined_call_operand.vmem [shape: bf16[128,32], index: 11, kind: input, shape index: {}]   ;;  %s2722_s12 = inlined_call_operand.vmem [shape: f32[1,32], index: 12, kind: input, shape index: {}]   ;;  %s2723_s13 = inlined_call_operand.hbm [shape: f32[2,8,32], index: 13, kind: output, shape index: {}]  }
   0x1   :  { %2724 = sst [smem:[#allocation5_spill]] %s2710_s0 }
   0x2   :  { %2725 = sst [smem:[#allocation6_spill]] %s2711_s1 }
   0x3   :  { %2726 = sst [smem:[#allocation7_spill]] %s2712_s2 }
   0x4   :  { %18 = vsyncpa [#allocation3], 0 }
   0x5   :  { %20 = vsyncpa [#allocation3 + $0x1], 0  ;;  %s2319_s25 = smov 0   ;;  %s2321_s26 = smov 0  }
   0x6   :  { %s2323_s27 = smov 0   ;;  %s2325_s28 = smov 0  }
   0x7 LB: > { %s2340_s29 = sadd.s32 4294967295, %s2228_s28   ;;  %s1818_s30 = sadd.s32 4294967294, %s2228_s28   ;;  %s2228_s28 = sphi %s2325_s28, %s2735_s28   ;;  %s2224_s27 = sphi %s2323_s27, %s2734_s27   ;;  %s2220_s26 = sphi %s2321_s26, %s2733_s26   ;;  %s2216_s25 = sphi %s2319_s25, %s2732_s25  }
   0x8   : > { %s2344_s14 = sadd.s32 1, %s2228_s28   ;;  %s311_s15 = sadd.s32 1, %s2224_s27 }
   0x9   : > { %s308_s16 = ssub.s32 %s2228_s28, %s2344_s14  ;;  %p321_p0 = scmp.ne.s32.totalorder %s2224_s27, %s2220_s26 }
   0xa   : > { %p309_p1 = scmp.eq.s32.totalorder %s308_s16, 0  ;;  %p322_p2 = scmp.eq.s32.totalorder %s2340_s29, 1 }
   0xb   : > { %p327_p3 = scmp.ne.s32.totalorder %s2220_s26, %s2216_s25  ;;  %p328_p4 = scmp.eq.s32.totalorder %s1818_s30, 1 }
   0xc   : > { %s2355_s17 = scalar_select %p309_p1, %s2224_s27, %s311_s15  }
   0xd   : > { %p2357_p5 = por %p322_p2, %p321_p0  ;;  %p2361_p6 = por %p328_p4, %p327_p3 }
   0xe   : > { %p1821_p7 = scmp.ge.s32.totalorder %s2228_s28, 1  ;;  %p389_p8 = scmp.lt.s32.totalorder %s2228_s28, 3 }
  0x10   : > { %p390_p9 = pnand %p1821_p7, %p389_p8 }
  0x11   : > { %p432_p10 = scmp.lt.s32.totalorder (!%p390_p9), %s2340_s29, 1  ;;  %vm438_vm0 = vcmask (!%p390_p9), 261120   ;;  %s2729_s0 = sld [smem:[#allocation5_spill]] (!%p390_p9)  ;;  %v2230_v8 = vmov (!%p390_p9), 0.0   ;;  %vm2231_vm1 = vmmov (!%p390_p9), 0   ;;  %vm554_vm2 = vcmask (!%p390_p9), 31744  }
  0x12   : > { %393 = sbr.rel (%p390_p9) target bundleno = 2706 (0xa92), region = 72  ;;  %s2730_s1 = sld [smem:[#allocation6_spill]] (!%p390_p9)  ;;  %1919 = vmatprep.subr.bf16.mxu0 (!%p390_p9), %v2230_v8  ;;  %1923 = vmatprep.mubr.msk.bf16.mxu0 (!%p390_p9), %vm2231_vm1, %v2230_v8  ;;  %v1824_v14 = vld [vmem:[%s2715_s5] ss:$0 sm:$0xff] (!%p390_p9)  ;;  %vm1039_vm3 = vcmask (!%p390_p9), 1043456   ;;  %vm937_vm4 = vcmask (!%p390_p9), 64512  }
  0x13   : > { %1939 = vmatprep.subr.bf16.mxu1 (!%p390_p9), %v2230_v8  ;;  %1941 = vmatprep.mubr.msk.bf16.mxu1 (!%p390_p9), %vm2231_vm1, %v2230_v8  ;;  %v1825_v16 = vld [vmem:[%s2716_s6] ss:$0 sm:$0xff] (!%p390_p9)  ;;  %s2731_s2 = sld [smem:[#allocation7_spill]] (!%p390_p9)  ;;  %s2232_s16 = smov (!%p390_p9), 116   ;;  %vm1453_vm5 = vcmask (!%p390_p9), 97280   ;;  %vm1456_vm6 = vcmask (!%p390_p9), 130048  }
  0x14   : > { %s2235_s22 = smov (!%p390_p9), 112   ;;  %s2236_s23 = smov (!%p390_p9), 108   ;;  %vm1459_vm7 = vcmask (!%p390_p9), 162816   ;;  %vm1462_vm8 = vcmask (!%p390_p9), 195584   ;;  %vm1465_vm9 = vcmask (!%p390_p9), 228352  }
  0x15   : > { %s2238_s30 = smov (!%p390_p9), 100   ;;  %s2239_s15 = smov (!%p390_p9), 96  }
  0x18   : > { %v2116_v7 = vld [vmem:[%s2730_s1] sm:$0xff] (!%p390_p9)   ;;  %v2117_v9 = vld [vmem:[%s2730_s1 + $0x8] sm:$0xff] (!%p390_p9)  }
  0x19   : > { %s433_s20 = scalar_select %p432_p10, %s2340_s29, 1  ;;  %1920 = vmatpush3.bf16.msra.mxu0 %v2116_v7  ;;  %v1826_v20 = vld [vmem:[%s2731_s2] ss:$0 sm:$0xff] }
  0x1a   : > { %1921 = vmatprep.subr.bf16.mxu0 %v2230_v8 }
  0x1b   : > { %s1823_s21 = sshll.u32 %s433_s20, 3  ;;  %s2233_s20 = smov 124  }
  0x1c   : > { %s435_s24 = scalar_lea.vmem %s2729_s0, %s1823_s21  ;;  %s2234_s21 = smov 120  }
  0x1d   : > { %v2372_v0 = vld [vmem:[%s435_s24] sm:$0xff]  ;;  %1922 = vmatpush3.bf16.msra.mxu0 %v2117_v9  ;;  %s2237_s24 = smov 104  }
  0x1e   : > { %v439_v1 = vsel %vm438_vm0, %v2372_v0, 0.0  ;;  %1927 = vmatprep.subr.bf16.mxu0 %v2230_v8 }
  0x1f   : > { %440 = vadd.xlane.f32.xlu0 %v439_v1 }
  0xac   : > { %v441_v2 = vpop.xlane.xlu0 %440 }
  0xad   : > { %v443_v3 = vmul.f32 0.03125, %v441_v2 }
  0xaf   : > { %v444_v4 = vsub.f32 %v2372_v0, %v443_v3 }
  0xb1   : > { %v445_v5 = vmul.f32 %v444_v4, %v444_v4 }
  0xb3   : > { %v446_v6 = vsel %vm438_vm0, %v445_v5, 0.0 }
  0xb4   : > { %447 = vadd.xlane.f32.xlu0 %v446_v6 }
 0x141   : > { %v448_v10 = vpop.xlane.xlu0 %447 }
 0x142   : > { %v449_v11 = vmul.f32 0.03125, %v448_v10 }
 0x144   : > { %v450_v12 = vadd.f32 1e-05, %v449_v11 }
 0x146   : > { %2130 = vrsqrt.f32 %v450_v12 }
 0x150   : > { %v2131_v13 = vpop.eup %2130 }
 0x151   : > { %v452_v15 = vmul.f32 %v2131_v13, %v444_v4 }
 0x153   : > { %v460_v17 = vmul.f32 %v1824_v14, %v452_v15 }
 0x155   : > { %v468_v18 = vadd.f32 %v1825_v16, %v460_v17 }
 0x157   : > { %v469_v19 = vpack.c.bf16 %v468_v18, %v468_v18 }
 0x159   : > { %1924 = vmatmul.mubr.msk.bf16.vlgmr.msra.gmra.mrb[0].mxu0 %vm438_vm0, %v469_v19 }
 0x15a   : > { %1929 = vmatprep.mubr.msk.bf16.mxu0 %vm2231_vm1, %v2230_v8 }
 0x22c   : > { %v530_v21 = vpop.f32.mrb[0].mxu0 }
 0x22d   : > { %v531_v22 = vadd.f32 %v1826_v20, %v530_v21  ;;  %v1925_v23 = vpop.f32.mrb[1].mxu0 }
 0x22e   : > { %v533_v24 = vpop.f32.mrb[2].mxu0 }
 0x22f   : > { %v536_v25 = vpack.c.bf16 %v531_v22, %v531_v22  ;;  %v1926_v26 = vpop.f32.mrb[3].mxu0 }
 0x231   : > { %542 = vrot.lane.b32.xlu0 %v536_v25, %s2232_s16  ;;  %538 = vrot.lane.b32.xlu1 %v536_v25, %s2233_s20  ;;  %s2240_s16 = smov 64   ;;  %s2241_s20 = smov 4  }
 0x235   : > { %540 = vrot.lane.b32.xlu1 %v536_v25, %s2234_s21  ;;  %s2242_s21 = smov 8  }
 0x239   : > { %544 = vrot.lane.b32.xlu1 %v536_v25, %s2235_s22  ;;  %s2243_s22 = smov 12  }
 0x23d   : > { %546 = vrot.lane.b32.xlu1 %v536_v25, %s2236_s23  ;;  %s1866_s23 = sshll.u32 %s2340_s29, 7 }
 0x23e   : > { %s2667_s1 = scalar_lea.hbm %s2723_s13, %s1866_s23 }
 0x241   : > { %548 = vrot.lane.b32.xlu1 %v536_v25, %s2237_s24 }
 0x245   : > { %550 = vrot.lane.b32.xlu1 %v536_v25, %s2238_s30 }
 0x249   : > { %552 = vrot.lane.b32.xlu1 %v536_v25, %s2239_s15 }
 0x2a3   : > { %v2404_v27 = vpop.permute.xlu1 %538  ;;  %v2407_v28 = vpop.permute.xlu0 %542 }
 0x2a4   : > { %601 = vrot.lane.b32.xlu1 %v2404_v27, %s2239_s15 }
 0x2a7   : > { %v2409_v29 = vpop.permute.xlu1 %540 }
 0x2a8   : > { %697 = vrot.lane.b32.xlu1 %v2407_v28, %s2239_s15  ;;  %649 = vrot.lane.b32.xlu0 %v2409_v29, %s2239_s15 }
 0x2ab   : > { %v2413_v30 = vpop.permute.xlu1 %544 }
 0x2ac   : > { %745 = vrot.lane.b32.xlu0 %v2413_v30, %s2239_s15 }
 0x2af   : > { %v2416_v31 = vpop.permute.xlu1 %546 }
 0x2b0   : > { %793 = vrot.lane.b32.xlu1 %v2416_v31, %s2239_s15 }
 0x2b3   : > { %v2419_v32 = vpop.permute.xlu1 %548 }
 0x2b4   : > { %841 = vrot.lane.b32.xlu0 %v2419_v32, %s2239_s15 }
 0x2b7   : > { %v2422_v33 = vpop.permute.xlu1 %550 }
 0x2b8   : > { %889 = vrot.lane.b32.xlu1 %v2422_v33, %s2239_s15 }
 0x2bb   : > { %v553_v34 = vpop.permute.xlu1 %552 }
 0x2bc   : > { %v559_v35 = vsel %vm554_vm2, %v553_v34, 0  ;;  %1034 = vrot.lane.b32.xlu1 %v536_v25, %s2240_s16 }
 0x2bd   : > { %1928 = vmatpush3.bf16.xpose.msra.mxu0 %v559_v35 }
 0x2be   : > { %1933 = vmatprep.subr.bf16.mxu0 %v2230_v8 }
 0x2c4   : > { %1930 = vmatmul.mubr.msk.bf16.vlgmr.msra.gmra.mrb[4].mxu0 %vm554_vm2, %v536_v25 }
 0x2c5   : > { %1935 = vmatprep.mubr.msk.bf16.mxu0 %vm2231_vm1, %v2230_v8 }
 0x316   : > { %v602_v36 = vpop.permute.xlu1 %601 }
 0x317   : > { %v607_v37 = vsel %vm554_vm2, %v602_v36, 0 }
 0x318   : > { %1934 = vmatpush3.bf16.xpose.msra.mxu0 %v607_v37 }
 0x319   : > { %1945 = vmatprep.subr.bf16.mxu0 %v2230_v8 }
 0x31a   : > { %v650_v38 = vpop.permute.xlu0 %649  ;;  %v698_v40 = vpop.permute.xlu1 %697 }
 0x31b   : > { %v655_v39 = vsel %vm554_vm2, %v650_v38, 0  ;;  %v703_v41 = vsel %vm554_vm2, %v698_v40, 0 }
 0x31c   : > { %1940 = vmatpush3.bf16.xpose.msra.mxu1 %v655_v39 }
 0x31d   : > { %1951 = vmatprep.subr.bf16.mxu1 %v2230_v8 }
 0x31e   : > { %v746_v42 = vpop.permute.xlu0 %745 }
 0x31f   : > { %1936 = vmatmul.mubr.msk.bf16.vlgmr.msra.gmra.mrb[8].mxu0 %vm554_vm2, %v2404_v27  ;;  %v751_v43 = vsel %vm554_vm2, %v746_v42, 0 }
 0x320   : > { %1946 = vmatpush3.bf16.xpose.msra.mxu0 %v703_v41  ;;  %1947 = vmatprep.mubr.msk.bf16.mxu0 %vm2231_vm1, %v2230_v8 }
 0x321   : > { %1957 = vmatprep.subr.bf16.mxu0 %v2230_v8 }
 0x322   : > { %v794_v44 = vpop.permute.xlu1 %793 }
 0x323   : > { %1942 = vmatmul.mubr.msk.bf16.vlgmr.msra.gmra.mrb[0].mxu1 %vm554_vm2, %v2409_v29  ;;  %v799_v45 = vsel %vm554_vm2, %v794_v44, 0 }
 0x324   : > { %1952 = vmatpush3.bf16.xpose.msra.mxu1 %v751_v43  ;;  %1953 = vmatprep.mubr.msk.bf16.mxu1 %vm2231_vm1, %v2230_v8 }
 0x325   : > { %1963 = vmatprep.subr.bf16.mxu1 %v2230_v8 }
 0x326   : > { %v842_v46 = vpop.permute.xlu0 %841 }
 0x327   : > { %1948 = vmatmul.mubr.msk.bf16.vlgmr.msra.gmra.mrb[12].mxu0 %vm554_vm2, %v2407_v28  ;;  %v847_v48 = vsel %vm554_vm2, %v842_v46, 0 }
 0x328   : > { %1958 = vmatpush3.bf16.xpose.msra.mxu0 %v799_v45  ;;  %1959 = vmatprep.mubr.msk.bf16.mxu0 %vm2231_vm1, %v2230_v8 }
 0x329   : > { %1969 = vmatprep.subr.bf16.mxu0 %v2230_v8 }
 0x32a   : > { %v890_v47 = vpop.permute.xlu1 %889 }
 0x32b   : > { %1954 = vmatmul.mubr.msk.bf16.vlgmr.msra.gmra.mrb[4].mxu1 %vm554_vm2, %v2413_v30  ;;  %v895_v49 = vsel %vm554_vm2, %v890_v47, 0 }
 0x32c   : > { %1964 = vmatpush3.bf16.xpose.msra.mxu1 %v847_v48  ;;  %1965 = vmatprep.mubr.msk.bf16.mxu1 %vm2231_vm1, %v2230_v8 }
 0x32d   : > { %1975 = vmatprep.subr.bf16.mxu1 %v2230_v8 }
 0x32e   : > { %v1035_v50 = vpop.permute.xlu1 %1034 }
 0x32f   : > { %1960 = vmatmul.mubr.msk.bf16.vlgmr.msra.gmra.mrb[16].mxu0 %vm554_vm2, %v2416_v31  ;;  %v1041_v51 = vsel %vm1039_vm3, %v1035_v50, 0 }
 0x330   : > { %1970 = vmatpush3.bf16.xpose.msra.mxu0 %v895_v49  ;;  %1971 = vmatprep.mubr.msk.bf16.mxu0 %vm2231_vm1, %v2230_v8 }
 0x331   : > { %1981 = vmatprep.subr.bf16.mxu0 %v2230_v8 }
 0x333   : > { %1966 = vmatmul.mubr.msk.bf16.vlgmr.msra.gmra.mrb[8].mxu1 %vm554_vm2, %v2419_v32 }
 0x334   : > { %1976 = vmatpush3.bf16.msra.mxu1 %v1041_v51  ;;  %1977 = vmatprep.mubr.msk.bf16.mxu1 %vm2231_vm1, %v2230_v8 }
 0x335   : > { %1987 = vmatprep.subr.bf16.mxu1 %v2230_v8 }
 0x337   : > { %1972 = vmatmul.mubr.msk.bf16.vlgmr.msra.gmra.mrb[20].mxu0 %vm554_vm2, %v2422_v33 }
 0x338   : > { %1983 = vmatprep.mubr.msk.bf16.mxu0 %vm2231_vm1, %v2230_v8 }
 0x397   : > { %v595_v52 = vpop.f32.mrb[4].mxu0 }
 0x398   : > { %v1931_v53 = vpop.f32.mrb[5].mxu0  ;;  %v938_v54 = vsel %vm937_vm4, %v595_v52, -inf }
 0x399   : > { %939 = vmax.xlane.f32.xlu0 %v938_v54  ;;  %v598_v55 = vpop.f32.mrb[6].mxu0 }
 0x39a   : > { %v1932_v56 = vpop.f32.mrb[7].mxu0 }
 0x3f2   : > { %v643_v57 = vpop.f32.mrb[8].mxu0 }
 0x3f3   : > { %v1937_v58 = vpop.f32.mrb[9].mxu0  ;;  %v941_v59 = vsel %vm937_vm4, %v643_v57, -inf }
 0x3f4   : > { %942 = vmax.xlane.f32.xlu1 %v941_v59  ;;  %v646_v60 = vpop.f32.mrb[10].mxu0 }
 0x3f5   : > { %v1938_v61 = vpop.f32.mrb[11].mxu0 }
 0x3f6   : > { %v691_v62 = vpop.f32.mrb[0].mxu1 }
 0x3f7   : > { %v1943_v63 = vpop.f32.mrb[1].mxu1  ;;  %v944_v1 = vsel %vm937_vm4, %v691_v62, -inf }
 0x3f8   : > { %v694_v2 = vpop.f32.mrb[2].mxu1  ;;  %945 = vmax.xlane.f32.xlu0 %v944_v1 }
 0x3f9   : > { %v1944_v3 = vpop.f32.mrb[3].mxu1 }
 0x3fa   : > { %v739_v4 = vpop.f32.mrb[12].mxu0 }
 0x3fb   : > { %v1949_v5 = vpop.f32.mrb[13].mxu0  ;;  %v947_v6 = vsel %vm937_vm4, %v739_v4, -inf }
 0x3fc   : > { %948 = vmax.xlane.f32.xlu0 %v947_v6  ;;  %v742_v7 = vpop.f32.mrb[14].mxu0 }
 0x3fd   : > { %v1950_v9 = vpop.f32.mrb[15].mxu0 }
 0x3fe   : > { %v2479_v10 = vpop.f32.mrb[4].mxu1 }
 0x3ff   : > { %v1955_v11 = vpop.f32.mrb[5].mxu1  ;;  %v950_v12 = vsel %vm937_vm4, %v2479_v10, -inf }
 0x400   : > { %v790_v13 = vpop.f32.mrb[6].mxu1  ;;  %951 = vmax.xlane.f32.xlu1 %v950_v12 }
 0x401   : > { %v1956_v14 = vpop.f32.mrb[7].mxu1 }
 0x402   : > { %v2483_v15 = vpop.f32.mrb[16].mxu0 }
 0x403   : > { %v1961_v16 = vpop.f32.mrb[17].mxu0  ;;  %v953_v17 = vsel %vm937_vm4, %v2483_v15, -inf }
 0x404   : > { %954 = vmax.xlane.f32.xlu0 %v953_v17  ;;  %v838_v18 = vpop.f32.mrb[18].mxu0 }
 0x405   : > { %v1962_v19 = vpop.f32.mrb[19].mxu0 }
 0x406   : > { %v883_v20 = vpop.f32.mrb[8].mxu1 }
 0x407   : > { %v1967_v21 = vpop.f32.mrb[9].mxu1  ;;  %v956_v22 = vsel %vm937_vm4, %v883_v20, -inf }
 0x408   : > { %v886_v23 = vpop.f32.mrb[10].mxu1  ;;  %957 = vmax.xlane.f32.xlu1 %v956_v22 }
 0x409   : > { %v1968_v24 = vpop.f32.mrb[11].mxu1 }
 0x40a   : > { %v931_v25 = vpop.f32.mrb[20].mxu0 }
 0x40b   : > { %v1973_v26 = vpop.f32.mrb[21].mxu0  ;;  %v959_v34 = vsel %vm937_vm4, %v931_v25, -inf }
 0x40c   : > { %960 = vmax.xlane.f32.xlu0 %v959_v34  ;;  %v934_v35 = vpop.f32.mrb[22].mxu0 }
 0x40d   : > { %v1974_v36 = vpop.f32.mrb[23].mxu0 }
 0x419   : > { %1131 = vrot.lane.b32.xlu1 %v2409_v29, %s2240_s16 }
 0x41d   : > { %1179 = vrot.lane.b32.xlu1 %v2407_v28, %s2240_s16 }
 0x422   : > { %1083 = vrot.lane.b32.xlu0 %v2404_v27, %s2240_s16 }
 0x426   : > { %v940_v37 = vpop.xlane.xlu0 %939 }
 0x427   : > { %v962_v38 = vsub.f32 %v595_v52, %v940_v37 }
 0x429   : > { %v970_v39 = vmul.f32 1.442695, %v962_v38 }
 0x42b   : > { %2132 = vpow2.f32 %v970_v39 }
 0x435   : > { %v2495_v40 = vpop.eup %2132 }
 0x436   : > { %v986_v41 = vsel %vm937_vm4, %v2495_v40, 0.0 }
 0x441   : > { %987 = vadd.xlane.f32.xlu1 %v986_v41 }
 0x481   : > { %v943_v42 = vpop.xlane.xlu1 %942 }
 0x482   : > { %v963_v43 = vsub.f32 %v643_v57, %v943_v42 }
 0x484   : > { %v972_v44 = vmul.f32 1.442695, %v963_v43 }
 0x485   : > { %v946_v29 = vpop.xlane.xlu0 %945 }
 0x486   : > { %2134 = vpow2.f32 %v972_v44  ;;  %v964_v45 = vsub.f32 %v691_v62, %v946_v29 }
 0x488   : > { %v974_v28 = vmul.f32 1.442695, %v964_v45 }
 0x489   : > { %v949_v46 = vpop.xlane.xlu0 %948 }
 0x48a   : > { %2136 = vpow2.f32 %v974_v28  ;;  %v965_v27 = vsub.f32 %v739_v4, %v949_v46 }
 0x48c   : > { %v976_v47 = vmul.f32 1.442695, %v965_v27 }
 0x48d   : > { %v952_v58 = vpop.xlane.xlu1 %951 }
 0x48e   : > { %2138 = vpow2.f32 %v976_v47  ;;  %v966_v59 = vsub.f32 %v2479_v10, %v952_v58 }
 0x490   : > { %v2499_v48 = vpop.eup %2134  ;;  %v978_v62 = vmul.f32 1.442695, %v966_v59 }
 0x491   : > { %v989_v49 = vsel %vm937_vm4, %v2499_v48, 0.0  ;;  %v955_v51 = vpop.xlane.xlu0 %954 }
 0x492   : > { %990 = vadd.xlane.f32.xlu0 %v989_v49  ;;  %v967_v61 = vsub.f32 %v2483_v15, %v955_v51  ;;  %2140 = vpow2.f32 %v978_v62 }
 0x494   : > { %v2503_v50 = vpop.eup %2136  ;;  %v980_v1 = vmul.f32 1.442695, %v967_v61 }
 0x495   : > { %v992_v52 = vsel %vm937_vm4, %v2503_v50, 0.0  ;;  %v958_v60 = vpop.xlane.xlu1 %957 }
 0x496   : > { %993 = vadd.xlane.f32.xlu1 %v992_v52  ;;  %v968_v63 = vsub.f32 %v883_v20, %v958_v60  ;;  %2142 = vpow2.f32 %v980_v1 }
 0x498   : > { %v2507_v53 = vpop.eup %2138  ;;  %v982_v2 = vmul.f32 1.442695, %v968_v63 }
 0x499   : > { %v961_v54 = vpop.xlane.xlu0 %960  ;;  %v995_v55 = vsel %vm937_vm4, %v2507_v53, 0.0  ;;  %v1132_v5 = vpop.permute.xlu1 %1131 }
 0x49a   : > { %996 = vadd.xlane.f32.xlu0 %v995_v55  ;;  %v969_v3 = vsub.f32 %v931_v25, %v961_v54  ;;  %2144 = vpow2.f32 %v982_v2  ;;  %v1137_v18 = vsel %vm1039_vm3, %v1132_v5, 0 }
 0x49c   : > { %v984_v4 = vmul.f32 1.442695, %v969_v3 }
 0x49d   : > { %v1084_v56 = vpop.permute.xlu0 %1083  ;;  %v1180_v6 = vpop.permute.xlu1 %1179 }
 0x49e   : > { %v1089_v57 = vsel %vm1039_vm3, %v1084_v56, 0  ;;  %2146 = vpow2.f32 %v984_v4  ;;  %v1185_v26 = vsel %vm1039_vm3, %v1180_v6, 0 }
 0x49f   : > { %1982 = vmatpush3.bf16.msra.mxu0 %v1089_v57 }
 0x4a0   : > { %1993 = vmatprep.subr.bf16.mxu0 %v2230_v8 }
 0x4a7   : > { %1275 = vrot.lane.b32.xlu1 %v2416_v31, %s2240_s16  ;;  %v2519_v31 = vpop.eup %2140 }
 0x4a8   : > { %v998_v7 = vsel %vm937_vm4, %v2519_v31, 0.0 }
 0x4b0   : > { %1227 = vrot.lane.b32.xlu0 %v2413_v30, %s2240_s16  ;;  %v2521_v30 = vpop.eup %2142 }
 0x4b1   : > { %v2525_v9 = vpop.eup %2144  ;;  %v1001_v12 = vsel %vm937_vm4, %v2521_v30, 0.0 }
 0x4b2   : > { %v1004_v11 = vsel %vm937_vm4, %v2525_v9, 0.0  ;;  %v2531_v13 = vpop.eup %2146 }
 0x4b3   : > { %v1007_v14 = vsel %vm937_vm4, %v2531_v13, 0.0 }
 0x4cb   : > { %999 = vadd.xlane.f32.xlu1 %v998_v7 }
 0x4ce   : > { %v988_v10 = vpop.xlane.xlu1 %987 }
 0x4cf   : > { %2148 = vrcp.f32 %v988_v10  ;;  %1005 = vadd.xlane.f32.xlu1 %v1004_v11  ;;  %1002 = vadd.xlane.f32.xlu0 %v1001_v12 }
 0x4d3   : > { %1008 = vadd.xlane.f32.xlu0 %v1007_v14  ;;  %v2119_v14 = vld [vmem:[%s2713_s3 + $0x8] sm:$0xff]  }
 0x4d9   : > { %v2149_v15 = vpop.eup %2148 }
 0x4da   : > { %v1018_v16 = vmul.f32 %v2149_v15, %v2495_v40 }
 0x4dc   : > { %v1026_v17 = vpack.c.bf16 %v1018_v16, %v1018_v16 }
 0x4de   : > { %1978 = vmatmul.mubr.msk.bf16.vlgmr.msra.gmra.mrb[12].mxu1 %vm937_vm4, %v1026_v17 }
 0x4df   : > { %1988 = vmatpush3.bf16.msra.mxu1 %v1137_v18  ;;  %1989 = vmatprep.mubr.msk.bf16.mxu1 %vm2231_vm1, %v2230_v8 }
 0x4e0   : > { %1371 = vrot.lane.b32.xlu1 %v2422_v33, %s2240_s16  ;;  %1999 = vmatprep.subr.bf16.mxu1 %v2230_v8 }
 0x4e9   : > { %1323 = vrot.lane.b32.xlu0 %v2419_v32, %s2240_s16  ;;  %s2244_s16 = smov 16  }
 0x51f   : > { %v991_v19 = vpop.xlane.xlu0 %990 }
 0x520   : > { %2150 = vrcp.f32 %v991_v19 }
 0x523   : > { %v994_v20 = vpop.xlane.xlu1 %993 }
 0x524   : > { %2152 = vrcp.f32 %v994_v20 }
 0x527   : > { %v997_v21 = vpop.xlane.xlu0 %996  ;;  %v1276_v38 = vpop.permute.xlu1 %1275 }
 0x528   : > { %2154 = vrcp.f32 %v997_v21  ;;  %v1281_v40 = vsel %vm1039_vm3, %v1276_v38, 0 }
 0x52a   : > { %v2151_v22 = vpop.eup %2150 }
 0x52b   : > { %v1019_v23 = vmul.f32 %v2151_v22, %v2499_v48  ;;  %v1228_v34 = vpop.permute.xlu0 %1227 }
 0x52c   : > { %v1233_v37 = vsel %vm1039_vm3, %v1228_v34, 0 }
 0x52d   : > { %v1027_v24 = vpack.c.bf16 %v1019_v23, %v1019_v23 }
 0x52e   : > { %v2153_v25 = vpop.eup %2152 }
 0x52f   : > { %v1020_v33 = vmul.f32 %v2153_v25, %v2503_v50  ;;  %1984 = vmatmul.mubr.msk.bf16.vlgmr.msra.gmra.mrb[24].mxu0 %vm937_vm4, %v1027_v24 }
 0x530   : > { %1994 = vmatpush3.bf16.msra.mxu0 %v1185_v26  ;;  %1995 = vmatprep.mubr.msk.bf16.mxu0 %vm2231_vm1, %v2230_v8 }
 0x531   : > { %v1028_v32 = vpack.c.bf16 %v1020_v33, %v1020_v33  ;;  %2005 = vmatprep.subr.bf16.mxu0 %v2230_v8 }
 0x532   : > { %v2155_v35 = vpop.eup %2154 }
 0x533   : > { %v1021_v36 = vmul.f32 %v2155_v35, %v2507_v53  ;;  %1990 = vmatmul.mubr.msk.bf16.vlgmr.msra.gmra.mrb[16].mxu1 %vm937_vm4, %v1028_v32 }
 0x534   : > { %2000 = vmatpush3.bf16.msra.mxu1 %v1233_v37  ;;  %2001 = vmatprep.mubr.msk.bf16.mxu1 %vm2231_vm1, %v2230_v8 }
 0x535   : > { %v1029_v39 = vpack.c.bf16 %v1021_v36, %v1021_v36  ;;  %2011 = vmatprep.subr.bf16.mxu1 %v2230_v8 }
 0x537   : > { %1996 = vmatmul.mubr.msk.bf16.vlgmr.msra.gmra.mrb[28].mxu0 %vm937_vm4, %v1029_v39 }
 0x538   : > { %2006 = vmatpush3.bf16.msra.mxu0 %v1281_v40  ;;  %2007 = vmatprep.mubr.msk.bf16.mxu0 %vm2231_vm1, %v2230_v8 }
 0x539   : > { %2017 = vmatprep.subr.bf16.mxu0 %v2230_v8 }
 0x558   : > { %v1000_v41 = vpop.xlane.xlu1 %999 }
 0x559   : > { %2156 = vrcp.f32 %v1000_v41 }
 0x55c   : > { %v1006_v42 = vpop.xlane.xlu1 %1005  ;;  %v1003_v43 = vpop.xlane.xlu0 %1002 }
 0x55d   : > { %2158 = vrcp.f32 %v1006_v42 }
 0x55e   : > { %2160 = vrcp.f32 %v1003_v43 }
 0x560   : > { %v1009_v44 = vpop.xlane.xlu0 %1008  ;;  %v1372_v51 = vpop.permute.xlu1 %1371 }
 0x561   : > { %2162 = vrcp.f32 %v1009_v44  ;;  %v1377_v54 = vsel %vm1039_vm3, %v1372_v51, 0 }
 0x563   : > { %v2157_v29 = vpop.eup %2156 }
 0x564   : > { %v1022_v45 = vmul.f32 %v2157_v29, %v2519_v31  ;;  %v1324_v28 = vpop.permute.xlu0 %1323 }
 0x565   : > { %v1329_v48 = vsel %vm1039_vm3, %v1324_v28, 0 }
 0x566   : > { %v1030_v46 = vpack.c.bf16 %v1022_v45, %v1022_v45 }
 0x567   : > { %v2159_v27 = vpop.eup %2158 }
 0x568   : > { %v2161_v47 = vpop.eup %2160  ;;  %2002 = vmatmul.mubr.msk.bf16.vlgmr.msra.gmra.mrb[20].mxu1 %vm937_vm4, %v1030_v46  ;;  %v1024_v50 = vmul.f32 %v2159_v27, %v2525_v9 }
 0x569   : > { %v1023_v49 = vmul.f32 %v2161_v47, %v2521_v30  ;;  %2012 = vmatpush3.bf16.msra.mxu1 %v1329_v48  ;;  %2013 = vmatprep.mubr.msk.bf16.mxu1 %vm2231_vm1, %v2230_v8 }
 0x56a   : > { %2023 = vmatprep.subr.bf16.mxu1 %v2230_v8  ;;  %v1032_v55 = vpack.c.bf16 %v1024_v50, %v1024_v50 }
 0x56b   : > { %v1031_v52 = vpack.c.bf16 %v1023_v49, %v1023_v49  ;;  %v2163_v53 = vpop.eup %2162 }
 0x56c   : > { %v1025_v56 = vmul.f32 %v2163_v53, %v2531_v13  ;;  %v2118_v13 = vld [vmem:[%s2713_s3] sm:$0xff]  }
 0x56d   : > { %2008 = vmatmul.mubr.msk.bf16.vlgmr.msra.gmra.mrb[32].mxu0 %vm937_vm4, %v1031_v52  ;;  %v1846_v52 = vld [vmem:[%s2714_s4] ss:$0 sm:$0xff] }
 0x56e   : > { %2018 = vmatpush3.bf16.msra.mxu0 %v1377_v54  ;;  %2019 = vmatprep.mubr.msk.bf16.mxu0 %vm2231_vm1, %v2230_v8  ;;  %v1033_v57 = vpack.c.bf16 %v1025_v56, %v1025_v56 }
 0x56f   : > { %2031 = vmatprep.subr.bf16.mxu0 %v2230_v8 }
 0x570   : > { %2014 = vmatmul.mubr.msk.bf16.vlgmr.msra.gmra.mrb[24].mxu1 %vm937_vm4, %v1032_v55 }
 0x571   : > { %2027 = vmatprep.mubr.msk.bf16.mxu1 %vm2231_vm1, %v2230_v8  ;;  %2024 = vmatpush3.bf16.msra.mxu1 %v2118_v13 }
 0x572   : > { %2025 = vmatprep.subr.bf16.mxu1 %v2230_v8 }
 0x575   : > { %2020 = vmatmul.mubr.msk.bf16.vlgmr.msra.gmra.mrb[36].mxu0 %vm937_vm4, %v1033_v57  ;;  %2026 = vmatpush3.bf16.msra.mxu1 %v2119_v14  ;;  %v1851_v14 = vld [vmem:[%s2718_s8] ss:$0 sm:$0xff] }
 0x576   : > { %2035 = vmatprep.mubr.msk.bf16.mxu0 %vm2231_vm1, %v2230_v8  ;;  %2039 = vmatprep.subr.bf16.mxu1 %v2230_v8 }
 0x5b1   : > { %v2583_v58 = vpop.f32.mrb[12].mxu1 }
 0x5b2   : > { %v1979_v59 = vpop.f32.mrb[13].mxu1  ;;  %v1419_v43 = vpack.c.bf16 %v2583_v58, %v2583_v58 }
 0x5b3   : > { %v1080_v60 = vpop.f32.mrb[14].mxu1 }
 0x5b4   : > { %v1980_v61 = vpop.f32.mrb[15].mxu1 }
 0x602   : > { %v1125_v62 = vpop.f32.mrb[24].mxu0 }
 0x603   : > { %v1420_v63 = vpack.c.bf16 %v1125_v62, %v1125_v62  ;;  %v1985_v1 = vpop.f32.mrb[25].mxu0 }
 0x604   : > { %v1128_v2 = vpop.f32.mrb[26].mxu0 }
 0x605   : > { %1428 = vrot.lane.b32.xlu0 %v1420_v63, %s2241_s20  ;;  %v1986_v3 = vpop.f32.mrb[27].mxu0  ;;  %s2245_s20 = smov 20   ;;  %v2120_v2 = vld [vmem:[%s2719_s9] sm:$0xff]  }
 0x606   : > { %v1173_v4 = vpop.f32.mrb[16].mxu1  ;;  %2032 = vmatpush3.bf16.msra.mxu0 %v2120_v2  ;;  %v2122_v3 = vld [vmem:[%s2721_s11] sm:$0xff]  }
 0x607   : > { %v1421_v5 = vpack.c.bf16 %v1173_v4, %v1173_v4  ;;  %v1991_v31 = vpop.f32.mrb[17].mxu1  ;;  %2033 = vmatprep.subr.bf16.mxu0 %v2230_v8  ;;  %v2123_v4 = vld [vmem:[%s2721_s11 + $0x8] sm:$0xff]  }
 0x608   : > { %v1176_v30 = vpop.f32.mrb[18].mxu1  ;;  %v2125_v31 = vld [vmem:[%s2721_s11 + $0x18] sm:$0xff]  }
 0x609   : > { %1431 = vrot.lane.b32.xlu1 %v1421_v5, %s2242_s21  ;;  %v1992_v6 = vpop.f32.mrb[19].mxu1  ;;  %s2246_s21 = smov 24   ;;  %v2124_v5 = vld [vmem:[%s2721_s11 + $0x10] sm:$0xff]   ;;  %v2126_v30 = vld [vmem:[%s2721_s11 + $0x20] sm:$0xff]  }
 0x60a   : > { %v1221_v7 = vpop.f32.mrb[28].mxu0  ;;  %v2127_v6 = vld [vmem:[%s2721_s11 + $0x28] sm:$0xff]  }
 0x60b   : > { %v1422_v9 = vpack.c.bf16 %v1221_v7, %v1221_v7  ;;  %v1997_v10 = vpop.f32.mrb[29].mxu0 }
 0x60c   : > { %v1224_v11 = vpop.f32.mrb[30].mxu0 }
 0x60d   : > { %1434 = vrot.lane.b32.xlu0 %v1422_v9, %s2243_s22  ;;  %v1998_v12 = vpop.f32.mrb[31].mxu0  ;;  %s2247_s22 = smov 28  }
 0x60e   : > { %v1850_v12 = vld [vmem:[%s2717_s7] ss:$0 sm:$0xff] }
 0x63b   : > { %v1269_v15 = vpop.f32.mrb[20].mxu1 }
 0x63c   : > { %v1423_v16 = vpack.c.bf16 %v1269_v15, %v1269_v15  ;;  %v2003_v17 = vpop.f32.mrb[21].mxu1 }
 0x63d   : > { %v1272_v18 = vpop.f32.mrb[22].mxu1 }
 0x63e   : > { %1437 = vrot.lane.b32.xlu1 %v1423_v16, %s2244_s16  ;;  %v2004_v19 = vpop.f32.mrb[23].mxu1  ;;  %v2128_v18 = vld [vmem:[%s2721_s11 + $0x30] sm:$0xff]   ;;  %s429_s16 = sand.u32 1, %s2220_s26  }
 0x63f   : > { %v2129_v19 = vld [vmem:[%s2721_s11 + $0x38] sm:$0xff]   ;;  %s1746_s29 = scalar_lea.sflag [#allocation3], %s429_s16 }
 0x640   : > { %v1317_v20 = vpop.f32.mrb[32].mxu0 }
 0x641   : > { %v1424_v21 = vpack.c.bf16 %v1317_v20, %v1317_v20  ;;  %v2009_v22 = vpop.f32.mrb[33].mxu0  ;;  %v1852_v20 = vld [vmem:[%s2720_s10] ss:$0 sm:$0xff] }
 0x642   : > { %v1320_v23 = vpop.f32.mrb[34].mxu0 }
 0x643   : > { %1440 = vrot.lane.b32.xlu0 %v1424_v21, %s2245_s20  ;;  %v2010_v24 = vpop.f32.mrb[35].mxu0  ;;  %v1365_v25 = vpop.f32.mrb[24].mxu1  ;;  %s1822_s20 = sshll.u32 %s429_s16, 3 }
 0x644   : > { %v1425_v26 = vpack.c.bf16 %v1365_v25, %v1365_v25  ;;  %v2015_v33 = vpop.f32.mrb[25].mxu1  ;;  %s431_s24 = scalar_lea.vmem [#allocation2], %s1822_s20 }
 0x645   : > { %v1368_v34 = vpop.f32.mrb[26].mxu1  ;;  %s1759_s30 = sshll.u32 %s431_s24, 4  ;;  %s2669_s30 = int_to_ptr.vmem [resolvable:$true] %s1759_s30 }
 0x646   : > { %1443 = vrot.lane.b32.xlu1 %v1425_v26, %s2246_s21  ;;  %v2016_v32 = vpop.f32.mrb[27].mxu1  ;;  %s2166_s20 = scalar_lea.vmem %s2669_s30, 128  ;;  %s2248_s21 = smov [#allocation2]  }
 0x647   : > { %p2167_p11 = scmp.ne.s32.totalorder %s2669_s30, %s2166_s20 }
 0x648   : > { %v1413_v35 = vpop.f32.mrb[36].mxu0 }
 0x649   : > { %v1426_v36 = vpack.c.bf16 %v1413_v35, %v1413_v35  ;;  %v2021_v37 = vpop.f32.mrb[37].mxu0  ;;  %p2168_p12 = pnand %p2167_p11, %p2357_p5 }
 0x64a   : > { %v1416_v38 = vpop.f32.mrb[38].mxu0 }
 0x64b   : > { %1446 = vrot.lane.b32.xlu0 %v1426_v36, %s2247_s22  ;;  %v2022_v39 = vpop.f32.mrb[39].mxu0  ;;  %p2169_p13 = pneg %p2168_p12  ;;  %s2170_s22 = sshll.u32 %s2248_s21, 4  ;;  %s2171_s22 = int_to_ptr.vmem [resolvable:$false] %s2170_s22 }
 0x64c   : > { %s2172_s2 = scalar_lea.vmem %s2171_s22, 256  ;;  %p2173_p0 = scmp.lt.s32.totalorder %s2669_s30, %s2171_s22 }
 0x64d   : > { %p2174_p1 = scmp.lt.s32.totalorder %s2172_s2, %s2166_s20 }
 0x64f   : > { %p2175_p2 = por %p2174_p1, %p2173_p0 }
 0x651   : > { %p2176_p3 = pnand %p2175_p2, %p2169_p13 }
 0x677   : > { %v1429_v40 = vpop.permute.xlu0 %1428 }
 0x678   : > { %v1450_v29 = vsel %vm554_vm2, %v1419_v43, %v1429_v40 }
 0x67b   : > { %v1432_v41 = vpop.permute.xlu1 %1431 }
 0x67c   : > { %v1452_v45 = vsel %vm937_vm4, %v1450_v29, %v1432_v41 }
 0x67f   : > { %v1435_v42 = vpop.permute.xlu0 %1434 }
 0x680   : > { %v1455_v46 = vsel %vm1453_vm5, %v1452_v45, %v1435_v42 }
 0x6b0   : > { %v1438_v44 = vpop.permute.xlu1 %1437 }
 0x6b1   : > { %v1458_v47 = vsel %vm1456_vm6, %v1455_v46, %v1438_v44 }
 0x6b5   : > { %v1441_v28 = vpop.permute.xlu0 %1440 }
 0x6b6   : > { %v1461_v48 = vsel %vm1459_vm7, %v1458_v47, %v1441_v28 }
 0x6b8   : > { %v1444_v27 = vpop.permute.xlu1 %1443 }
 0x6b9   : > { %v1464_v49 = vsel %vm1462_vm8, %v1461_v48, %v1444_v27 }
 0x6bd   : > { %v1447_v50 = vpop.permute.xlu0 %1446 }
 0x6be   : > { %v1467_v51 = vsel %vm1465_vm9, %v1464_v49, %v1447_v50 }
 0x6bf   : > { %2028 = vmatmul.mubr.msk.bf16.vlgmr.msra.gmra.mrb[28].mxu1 %vm438_vm0, %v1467_v51 }
 0x6c0   : > { %2055 = vmatprep.mubr.msk.bf16.mxu1 %vm2231_vm1, %v2230_v8  ;;  %2040 = vmatpush3.bf16.msra.mxu1 %v2122_v3 }
 0x6c1   : > { %2041 = vmatprep.subr.bf16.mxu1 %v2230_v8 }
 0x6c4   : > { %2042 = vmatpush3.bf16.msra.mxu1 %v2123_v4 }
 0x6c5   : > { %2043 = vmatprep.subr.bf16.mxu1 %v2230_v8 }
 0x6c8   : > { %2044 = vmatpush3.bf16.msra.mxu1 %v2124_v5 }
 0x6c9   : > { %2045 = vmatprep.subr.bf16.mxu1 %v2230_v8 }
 0x6cc   : > { %2046 = vmatpush3.bf16.msra.mxu1 %v2125_v31 }
 0x6cd   : > { %2047 = vmatprep.subr.bf16.mxu1 %v2230_v8 }
 0x6d0   : > { %2048 = vmatpush3.bf16.msra.mxu1 %v2126_v30 }
 0x6d1   : > { %2049 = vmatprep.subr.bf16.mxu1 %v2230_v8 }
 0x6d4   : > { %2050 = vmatpush3.bf16.msra.mxu1 %v2127_v6 }
 0x6d5   : > { %2051 = vmatprep.subr.bf16.mxu1 %v2230_v8 }
 0x6d8   : > { %2052 = vmatpush3.bf16.msra.mxu1 %v2128_v18 }
 0x6d9   : > { %2053 = vmatprep.subr.bf16.mxu1 %v2230_v8  ;;  %v1856_v8 = vld [vmem:[%s2722_s12] ss:$0 sm:$0xff] }
 0x6dc   : > { %2054 = vmatpush3.bf16.msra.mxu1 %v2129_v19 }
 0x792   : > { %v1527_v53 = vpop.f32.mrb[28].mxu1 }
 0x793   : > { %v1528_v54 = vadd.f32 %v1846_v52, %v1527_v53  ;;  %v2029_v55 = vpop.f32.mrb[29].mxu1 }
 0x794   : > { %v1530_v56 = vpop.f32.mrb[30].mxu1 }
 0x795   : > { %v2604_v57 = vadd.f32 %v1528_v54, %v2372_v0  ;;  %v2030_v58 = vpop.f32.mrb[31].mxu1  ;;  %v2121_v0 = vld [vmem:[%s2719_s9 + $0x8] sm:$0xff]  }
 0x796   : > { %2034 = vmatpush3.bf16.msra.mxu0 %v2121_v0 }
 0x797   : > { %v1534_v59 = vsel %vm438_vm0, %v2604_v57, 0.0 }
 0x798   : > { %1535 = vadd.xlane.f32.xlu1 %v1534_v59 }
 0x825   : > { %v1536_v60 = vpop.xlane.xlu1 %1535 }
 0x826   : > { %v1537_v61 = vmul.f32 0.03125, %v1536_v60 }
 0x828   : > { %v1538_v62 = vsub.f32 %v2604_v57, %v1537_v61 }
 0x82a   : > { %v1539_v63 = vmul.f32 %v1538_v62, %v1538_v62 }
 0x82c   : > { %v1540_v1 = vsel %vm438_vm0, %v1539_v63, 0.0 }
 0x82d   : > { %1541 = vadd.xlane.f32.xlu0 %v1540_v1 }
 0x8ba   : > { %v1542_v7 = vpop.xlane.xlu0 %1541 }
 0x8bb   : > { %v1543_v9 = vmul.f32 0.03125, %v1542_v7 }
 0x8bd   : > { %v1544_v10 = vadd.f32 1e-05, %v1543_v9 }
 0x8bf   : > { %2164 = vrsqrt.f32 %v1544_v10 }
 0x8c9   : > { %v2165_v11 = vpop.eup %2164 }
 0x8ca   : > { %v1546_v13 = vmul.f32 %v2165_v11, %v1538_v62 }
 0x8cc   : > { %v1554_v15 = vmul.f32 %v1850_v12, %v1546_v13 }
 0x8ce   : > { %v1562_v16 = vadd.f32 %v1851_v14, %v1554_v15 }
 0x8d0   : > { %v1563_v17 = vpack.c.bf16 %v1562_v16, %v1562_v16 }
 0x8d2   : > { %2036 = vmatmul.mubr.msk.bf16.vlgmr.msra.gmra.mrb[40].mxu0 %vm438_vm0, %v1563_v17 }
 0x9a5   : > { %v1624_v21 = vpop.f32.mrb[40].mxu0 }
 0x9a6   : > { %v1625_v22 = vadd.f32 %v1852_v20, %v1624_v21  ;;  %v2037_v23 = vpop.f32.mrb[41].mxu0 }
 0x9a7   : > { %v1627_v24 = vpop.f32.mrb[42].mxu0 }
 0x9a8   : > { %v1630_v25 = vmax.f32 %v1625_v22, 0.0  ;;  %v2038_v26 = vpop.f32.mrb[43].mxu0 }
 0x9aa   : > { %v1631_v33 = vpack.c.bf16 %v1630_v25, %v1630_v25 }
 0x9ac   : > { %2056 = vmatmul.mubr.bf16.vlgmr.msra.gmra.mrb[32].mxu1 %v1631_v33 }
 0xa7f   : > { %v1737_v34 = vpop.f32.mrb[32].mxu1 }
 0xa80   : > { %v1738_v32 = vadd.f32 %v1856_v8, %v1737_v34  ;;  %v2057_v35 = vpop.f32.mrb[33].mxu1 }
 0xa81   : > { %v1740_v36 = vpop.f32.mrb[34].mxu1 }
 0xa82   : > { %v1743_v37 = vadd.f32 %v1738_v32, %v2604_v57  ;;  %v2058_v38 = vpop.f32.mrb[35].mxu1 }
 0xa84   : > { %1744 = vst.msk [vmem:[%s431_s24] sm:$0xff] %vm438_vm0, %v1743_v37 }
 0xa85   : > { %2179 = shalt.err (!%p2176_p3)
}
 0xa86   : > { %s2180_s0 = scalar_lea.hbm %s2667_s1, 128  ;;  %s2184_s24 = scalar_lea.hbm %s2723_s13, 256 }
 0xa87   : > { %p2181_p4 = scmp.ne.s32.totalorder %s2667_s1, %s2180_s0  ;;  %p2185_p9 = scmp.lt.u32.totalorder %s2667_s1, %s2723_s13 }
 0xa88   : > { %p2186_p10 = scmp.lt.u32.totalorder %s2184_s24, %s2180_s0  ;;  %p2188_p12 = scmp.lt.u32.totalorder %s2180_s0, %s2667_s1 }
 0xa89   : > { %p2182_p7 = pnand %p2181_p4, %p2357_p5 }
 0xa8a   : > { %p2187_p11 = por %p2186_p10, %p2185_p9 }
 0xa8b   : > { %p2183_p8 = pneg %p2182_p7 }
 0xa8c   : > { %p2189_p13 = por %p2188_p12, %p2187_p11 }
 0xa8e   : > { %p2190_p0 = pnand %p2189_p13, %p2183_p8 }
 0xa90   : > { %2193 = shalt.err (!%p2190_p0)
}
 0xa91   : > { %2059 = dma.vmem_to_hbm [thread:$0]  (%p2357_p5), %s2669_s30, 128, %s2667_s1, %s1746_s29  }
 0xa92 PF: > { %p2065_p1 = scmp.ge.s32.totalorder %s2228_s28, 2  ;;  %s1771_s2 = sand.u32 1, %s2216_s25  }
 0xa93   : > { %s1772_s20 = scalar_lea.sflag [#allocation3], %s1771_s2 }
 0xa94   : > { %p2062_p2 = pnand %p2065_p1, %p2361_p6 }
 0xa96   : > { %2211 = dma.done.wait (!%p2062_p2), %s1772_s20, 128  }
 0xa97   : > { %2213 = vsyncadd (!%p2062_p2), %s1772_s20, 4294967168  ;;  %p23_p3 = scmp.ge.s32.totalorder %s2344_s14, 4   ;;  %s2732_s25 = smov %s2220_s26 }
 0xa98   : > { %s2733_s26 = smov %s2224_s27  ;;  %s2734_s27 = smov %s2355_s17 }
 0xa99   : > { %s2735_s28 = smov %s2344_s14  ;;  %25 = sbr.rel (!%p23_p3) target bundleno = 7 (0x7), region = 107 }
 0xaa0   :  { %1777 = vsyncpa [#allocation3], 1 }
 0xaa1   :  { %1779 = vsyncpa [#allocation3 + $0x1], 1 }

</bundles_post_ra>
